<compile_context>
chip_gen: v7x
topology: tpu7x:2x2x1
jax: 0.10.0
libtpu: 0.0.40
codegen_flags: <defaults>
</compile_context>

<pallas_src>
import jax
import jax.numpy as jnp
from jax import lax
from jax.experimental import pallas as pl
from jax.experimental.pallas import tpu as pltpu


def decoder_kernel(emb_ref, enc_ref, h0_ref, c0_ref,
                   wa_h_ref, wa_e_ref, ba_ref, v_ref,
                   wih_e_ref, wih_c_ref, whh_ref, bl_ref,
                   wfc_ref, bfc_ref,
                   preds_ref, hout_ref, cout_ref,
                   outs_scratch):
    T, Bt, E = emb_ref.shape          # time-major embeddings (T, B_tile, E)
    L = enc_ref.shape[1]
    H2 = enc_ref.shape[2]             # 2 * hidden
    H = h0_ref.shape[1]
    V = wfc_ref.shape[1]
    f32 = jnp.float32
    bf16 = jnp.bfloat16

    h0 = h0_ref[...]                  # (Bt, H)  f32 state
    c0 = c0_ref[...]                  # (Bt, H)
    enc_bf = enc_ref[...]             # (Bt, L, 2H) bf16
    enc_f32 = enc_bf.astype(f32)

    # ---------------- Attention (batched over Bt, lane-dense (Bt, L) scores) ----
    e_enc = jnp.dot(enc_bf.reshape(Bt * L, H2), wa_e_ref[...],
                    preferred_element_type=f32).reshape(Bt, L, H)
    e_hid = jnp.dot(h0.astype(bf16), wa_h_ref[...],
                    preferred_element_type=f32)                    # (Bt, H)
    energy = jnp.tanh(e_enc + e_hid[:, None, :] + ba_ref[...])     # (Bt, L, H)
    scores = jnp.sum(energy * v_ref[...], axis=-1)                 # (Bt, L) lane-dense
    m = jnp.max(scores, axis=-1, keepdims=True)
    p = jnp.exp(scores - m)
    attn = p * pl.reciprocal(jnp.sum(p, axis=-1, keepdims=True), approx=True)
    context = jnp.sum(attn[:, :, None] * enc_f32, axis=1)          # (Bt, 2H) f32

    # ---------------- LSTM: precompute h-independent gates, time-major ----------
    gx_emb = jnp.dot(emb_ref[...].reshape(T * Bt, E), wih_e_ref[...],
                     preferred_element_type=f32).reshape(T, Bt, 4 * H)
    gx_ctx = jnp.dot(context.astype(bf16), wih_c_ref[...],
                     preferred_element_type=f32)                   # (Bt, 4H)
    gates_x = gx_emb + (gx_ctx + bl_ref[...])[None, :, :]          # (T, Bt, 4H) f32

    whh = whh_ref[...]                                             # (H, 4H) bf16
    h, c = h0, c0
    for t in range(T):   # static unroll: T is small & fixed -> overlap MXU/EUP/VPU
        gates = gates_x[t] + jnp.dot(h.astype(bf16), whh,
                                     preferred_element_type=f32)   # (Bt, 4H)
        i = jax.nn.sigmoid(gates[:, 0 * H:1 * H])
        f = jax.nn.sigmoid(gates[:, 1 * H:2 * H])
        g = jnp.tanh(gates[:, 2 * H:3 * H])
        o = jax.nn.sigmoid(gates[:, 3 * H:4 * H])
        c = f * c + i * g
        h = o * jnp.tanh(c)
        outs_scratch[t] = h                                        # (Bt, H) aligned store

    # ---------------- Output projection: single (T*Bt, H)@(H, V) matmul ----------
    proj = jnp.dot(outs_scratch[...].reshape(T * Bt, H).astype(bf16), wfc_ref[...],
                   preferred_element_type=f32) + bfc_ref[...]
    preds_ref[...] = proj.reshape(T, Bt, V)
    hout_ref[...] = h
    cout_ref[...] = c


def decoder_forward(x_ids, hidden, encoder_outputs, params, *, b_tile=8):
    """x_ids: (B, T) int32; hidden = (h0, c0), each (1, B, H); encoder_outputs (B, L, 2H)."""
    h0, c0 = hidden
    B, T = x_ids.shape
    L = encoder_outputs.shape[1]
    H = h0.shape[-1]
    E = params["embedding"].shape[1]
    V = params["wfc"].shape[1]
    bf16 = jnp.bfloat16

    # Embedding lookup (gather) as glue.
    # TODO(synk): fuse the gather into the kernel via scalar-prefetched x_ids +
    # a pl.Element row-gather index_map on the embedding table (saves one HBM pass).
    emb = jnp.take(params["embedding"], x_ids, axis=0).astype(bf16)      # (B, T, E)
    emb_tm = jnp.transpose(emb, (1, 0, 2))                               # (T, B, E)

    b_tile = min(b_tile, B)
    n_tiles = pl.cdiv(B, b_tile)
    B_pad = n_tiles * b_tile
    pad = B_pad - B
    h0b, c0b = h0[0], c0[0]                                              # (B, H)
    enc = encoder_outputs
    if pad:
        emb_tm = jnp.pad(emb_tm, ((0, 0), (0, pad), (0, 0)))
        enc = jnp.pad(enc, ((0, pad), (0, 0), (0, 0)))
        h0b = jnp.pad(h0b, ((0, pad), (0, 0)))
        c0b = jnp.pad(c0b, ((0, pad), (0, 0)))
    enc = enc.astype(bf16)

    grid_spec = pltpu.PrefetchScalarGridSpec(
        num_scalar_prefetch=0,
        grid=(n_tiles,),
        in_specs=[
            pl.BlockSpec((T, b_tile, E), lambda b: (0, b, 0)),       # emb (time-major)
            pl.BlockSpec((b_tile, L, 2 * H), lambda b: (b, 0, 0)),   # encoder outputs
            pl.BlockSpec((b_tile, H), lambda b: (b, 0)),             # h0
            pl.BlockSpec((b_tile, H), lambda b: (b, 0)),             # c0
            pl.BlockSpec((H, H), lambda b: (0, 0)),                  # Wa (hidden part)
            pl.BlockSpec((2 * H, H), lambda b: (0, 0)),              # Wa (enc part)
            pl.BlockSpec((1, H), lambda b: (0, 0)),                  # ba
            pl.BlockSpec((1, H), lambda b: (0, 0)),                  # v
            pl.BlockSpec((E, 4 * H), lambda b: (0, 0)),              # W_ih (emb part)
            pl.BlockSpec((2 * H, 4 * H), lambda b: (0, 0)),          # W_ih (ctx part)
            pl.BlockSpec((H, 4 * H), lambda b: (0, 0)),              # W_hh
            pl.BlockSpec((1, 4 * H), lambda b: (0, 0)),              # b_ih + b_hh
            pl.BlockSpec((H, V), lambda b: (0, 0)),                  # W_fc
            pl.BlockSpec((1, V), lambda b: (0, 0)),                  # b_fc
        ],
        out_specs=[
            pl.BlockSpec((T, b_tile, V), lambda b: (0, b, 0)),       # predictions (time-major)
            pl.BlockSpec((b_tile, H), lambda b: (b, 0)),             # h_T
            pl.BlockSpec((b_tile, H), lambda b: (b, 0)),             # c_T
        ],
        scratch_shapes=[pltpu.VMEM((T, b_tile, H), jnp.float32)],
    )

    preds_tm, hT, cT = pl.pallas_call(
        decoder_kernel,
        grid_spec=grid_spec,
        out_shape=(jax.ShapeDtypeStruct((T, B_pad, V), jnp.float32),
                   jax.ShapeDtypeStruct((B_pad, H), jnp.float32),
                   jax.ShapeDtypeStruct((B_pad, H), jnp.float32)),
        compiler_params=pltpu.CompilerParams(
            dimension_semantics=("parallel",)),      # shard batch tiles across TCs (v7x)
    )(emb_tm, enc, h0b, c0b,
      params["wa_h"].astype(bf16), params["wa_e"].astype(bf16),
      params["ba"], params["v"],
      params["wih_e"].astype(bf16), params["wih_c"].astype(bf16),
      params["whh"].astype(bf16), params["b_lstm"],
      params["wfc"].astype(bf16), params["bfc"])

    preds = jnp.transpose(preds_tm, (1, 0, 2))[:B]   # (B, T, V) — layout plumbing only
    hT = hT[:B][None]                                # (1, B, H)
    cT = cT[:B][None]
    return preds, (hT, cT)


def decoder_ref(x_ids, hidden, encoder_outputs, params):
    """Pure-JAX reference mirroring the PyTorch forward (bf16 matmuls, f32 accumulate,
    matching the kernel's numerics as recommended by the review)."""
    bf16 = jnp.bfloat16
    f32 = jnp.float32
    h0, c0 = hidden
    B, T = x_ids.shape
    H = h0.shape[-1]

    emb = jnp.take(params["embedding"], x_ids, axis=0).astype(bf16)       # (B, T, E)
    enc_bf = encoder_outputs.astype(bf16)
    h_last = h0[-1]                                                       # (B, H)

    e_enc = jnp.einsum("bld,dh->blh", enc_bf, params["wa_e"].astype(bf16),
                       preferred_element_type=f32)
    e_hid = jnp.dot(h_last.astype(bf16), params["wa_h"].astype(bf16),
                    preferred_element_type=f32)
    energy = jnp.tanh(e_enc + e_hid[:, None, :] + params["ba"])
    scores = jnp.sum(params["v"] * energy, axis=-1)                       # (B, L)
    attn = jax.nn.softmax(scores, axis=1)
    context = jnp.einsum("bl,blh->bh", attn, encoder_outputs)             # (B, 2H) f32

    gx = jnp.einsum("bte,eg->btg", emb, params["wih_e"].astype(bf16),
                    preferred_element_type=f32)
    gc = jnp.dot(context.astype(bf16), params["wih_c"].astype(bf16),
                 preferred_element_type=f32)
    gates_x = gx + (gc + params["b_lstm"])[:, None, :]                    # (B, T, 4H)
    whh = params["whh"].astype(bf16)

    def step(carry, gx_t):
        h, c = carry
        gates = gx_t + jnp.dot(h.astype(bf16), whh, preferred_element_type=f32)
        i = jax.nn.sigmoid(gates[:, 0 * H:1 * H])
        f = jax.nn.sigmoid(gates[:, 1 * H:2 * H])
        g = jnp.tanh(gates[:, 2 * H:3 * H])
        o = jax.nn.sigmoid(gates[:, 3 * H:4 * H])
        c = f * c + i * g
        h = o * jnp.tanh(c)
        return (h, c), h

    (hT, cT), outs = lax.scan(step, (h0[0], c0[0]), jnp.swapaxes(gates_x, 0, 1))
    outs = jnp.swapaxes(outs, 0, 1)                                       # (B, T, H)
    preds = jnp.einsum("bth,hv->btv", outs.astype(bf16), params["wfc"].astype(bf16),
                       preferred_element_type=f32) + params["bfc"]
    return preds, (hT[None], cT[None])


if __name__ == "__main__":
    # Small but TPU-friendly shapes: V multiple of 128 (lane-dense preds), B = 8 (sublane tile).
    V, E, H = 128, 64, 64     # vocab, embedding_dim, hidden_size
    B, T, L = 8, 8, 16        # batch, decoder seq len, encoder seq len

    key = jax.random.PRNGKey(0)
    ks = jax.random.split(key, 16)

    params = {
        "embedding": 0.1 * jax.random.normal(ks[0], (V, E), jnp.float32),
        # Attention: Linear(3H, H) stored transposed, split into [h ; enc] parts
        "wa_h": 0.1 * jax.random.normal(ks[1], (H, H), jnp.float32),
        "wa_e": 0.1 * jax.random.normal(ks[2], (2 * H, H), jnp.float32),
        "ba": 0.1 * jax.random.normal(ks[3], (1, H), jnp.float32),
        "v": jax.random.uniform(ks[4], (1, H), jnp.float32),
        # LSTM(E + 2H -> H): weights stored transposed, input weight split
        "wih_e": 0.1 * jax.random.normal(ks[5], (E, 4 * H), jnp.float32),
        "wih_c": 0.1 * jax.random.normal(ks[6], (2 * H, 4 * H), jnp.float32),
        "whh": 0.1 * jax.random.normal(ks[7], (H, 4 * H), jnp.float32),
        "b_lstm": 0.1 * jax.random.normal(ks[8], (1, 4 * H), jnp.float32),  # b_ih + b_hh
        # fc: Linear(H, V) stored transposed
        "wfc": 0.1 * jax.random.normal(ks[9], (H, V), jnp.float32),
        "bfc": 0.1 * jax.random.normal(ks[10], (1, V), jnp.float32),
    }

    x_ids = jax.random.randint(ks[11], (B, T), 0, V, dtype=jnp.int32)
    enc_out = 0.5 * jax.random.normal(ks[12], (B, L, 2 * H), jnp.float32)
    h0 = 0.5 * jax.random.normal(ks[13], (1, B, H), jnp.float32)
    c0 = 0.5 * jax.random.normal(ks[14], (1, B, H), jnp.float32)

    preds, (hT, cT) = decoder_forward(x_ids, (h0, c0), enc_out, params)
    jax.block_until_ready((preds, hT, cT))

    preds_r, (hT_r, cT_r) = decoder_ref(x_ids, (h0, c0), enc_out, params)
    assert preds.shape == (B, T, V) and hT.shape == (1, B, H) and cT.shape == (1, B, H)
    assert jnp.allclose(preds, preds_r, atol=2e-2, rtol=2e-2)
    assert jnp.allclose(hT, hT_r, atol=2e-2, rtol=2e-2)
    assert jnp.allclose(cT, cT_r, atol=2e-2, rtol=2e-2)

    print("KERNEL_OK")
</pallas_src>

<mosaic_0001>
module attributes {stable_mosaic.version = 11 : i64} {
  func.func @decoder_kernel(%arg0: i32, %arg1: memref<8x8x64xbf16, #tpu.memory_space<vmem>>, %arg2: memref<8x16x128xbf16, #tpu.memory_space<vmem>>, %arg3: memref<8x64xf32, #tpu.memory_space<vmem>>, %arg4: memref<8x64xf32, #tpu.memory_space<vmem>>, %arg5: memref<64x64xbf16, #tpu.memory_space<vmem>>, %arg6: memref<128x64xbf16, #tpu.memory_space<vmem>>, %arg7: memref<1x64xf32, #tpu.memory_space<vmem>>, %arg8: memref<1x64xf32, #tpu.memory_space<vmem>>, %arg9: memref<64x256xbf16, #tpu.memory_space<vmem>>, %arg10: memref<128x256xbf16, #tpu.memory_space<vmem>>, %arg11: memref<64x256xbf16, #tpu.memory_space<vmem>>, %arg12: memref<1x256xf32, #tpu.memory_space<vmem>>, %arg13: memref<64x128xbf16, #tpu.memory_space<vmem>>, %arg14: memref<1x128xf32, #tpu.memory_space<vmem>>, %arg15: memref<8x8x128xf32, #tpu.memory_space<vmem>>, %arg16: memref<8x64xf32, #tpu.memory_space<vmem>>, %arg17: memref<8x64xf32, #tpu.memory_space<vmem>>, %arg18: memref<8x8x64xf32, #tpu.memory_space<vmem>>) attributes {dimension_semantics = [#tpu.dimension_semantics<parallel>], iteration_bounds = array<i64: 1>, scalar_prefetch = 0 : i64, scratch_operands = 1 : i64, tpu.core_type = #tpu.core_type<tc>, window_params = [{transform_indices = @transform_0, window_bounds = array<i64: 8, 8, 64>}, {transform_indices = @transform_1, window_bounds = array<i64: 8, 16, 128>}, {transform_indices = @transform_2, window_bounds = array<i64: 8, 64>}, {transform_indices = @transform_3, window_bounds = array<i64: 8, 64>}, {pipeline_mode = #tpu.pipeline_mode<synchronous>, transform_indices = @transform_4, window_bounds = array<i64: 64, 64>}, {pipeline_mode = #tpu.pipeline_mode<synchronous>, transform_indices = @transform_5, window_bounds = array<i64: 128, 64>}, {pipeline_mode = #tpu.pipeline_mode<synchronous>, transform_indices = @transform_6, window_bounds = array<i64: 1, 64>}, {pipeline_mode = #tpu.pipeline_mode<synchronous>, transform_indices = @transform_7, window_bounds = array<i64: 1, 64>}, {pipeline_mode = #tpu.pipeline_mode<synchronous>, transform_indices = @transform_8, window_bounds = array<i64: 64, 256>}, {pipeline_mode = #tpu.pipeline_mode<synchronous>, transform_indices = @transform_9, window_bounds = array<i64: 128, 256>}, {pipeline_mode = #tpu.pipeline_mode<synchronous>, transform_indices = @transform_10, window_bounds = array<i64: 64, 256>}, {pipeline_mode = #tpu.pipeline_mode<synchronous>, transform_indices = @transform_11, window_bounds = array<i64: 1, 256>}, {pipeline_mode = #tpu.pipeline_mode<synchronous>, transform_indices = @transform_12, window_bounds = array<i64: 64, 128>}, {pipeline_mode = #tpu.pipeline_mode<synchronous>, transform_indices = @transform_13, window_bounds = array<i64: 1, 128>}, {transform_indices = @transform_14, window_bounds = array<i64: 8, 8, 128>}, {transform_indices = @transform_15, window_bounds = array<i64: 8, 64>}, {transform_indices = @transform_16, window_bounds = array<i64: 8, 64>}]} {
    %c0 = arith.constant 0 : index
    %c0_0 = arith.constant 0 : index
    %0 = vector.load %arg3[%c0, %c0_0] : memref<8x64xf32, #tpu.memory_space<vmem>>, vector<8x64xf32>
    %c0_1 = arith.constant 0 : index
    %c0_2 = arith.constant 0 : index
    %1 = vector.load %arg4[%c0_1, %c0_2] : memref<8x64xf32, #tpu.memory_space<vmem>>, vector<8x64xf32>
    %c0_3 = arith.constant 0 : index
    %c0_4 = arith.constant 0 : index
    %c0_5 = arith.constant 0 : index
    %2 = vector.load %arg2[%c0_3, %c0_4, %c0_5] : memref<8x16x128xbf16, #tpu.memory_space<vmem>>, vector<8x16x128xbf16>
    %3 = arith.extf %2 : vector<8x16x128xbf16> to vector<8x16x128xf32>
    %4 = vector.shape_cast %2 : vector<8x16x128xbf16> to vector<128x128xbf16>
    %c0_6 = arith.constant 0 : index
    %c0_7 = arith.constant 0 : index
    %5 = vector.load %arg6[%c0_6, %c0_7] : memref<128x64xbf16, #tpu.memory_space<vmem>>, vector<128x64xbf16>
    %cst = arith.constant dense<0.000000e+00> : vector<128x64xf32>
    %6 = tpu.matmul %4, %5, %cst {dimension_numbers = #tpu.dot_dimension_numbers<[1], [0], [0], [1], [0, 0, 1, 1], [], []>} : vector<128x128xbf16>, vector<128x64xbf16>, vector<128x64xf32> -> vector<128x64xf32>
    %7 = vector.shape_cast %6 : vector<128x64xf32> to vector<8x16x64xf32>
    %8 = arith.truncf %0 : vector<8x64xf32> to vector<8x64xbf16>
    %c0_8 = arith.constant 0 : index
    %c0_9 = arith.constant 0 : index
    %9 = vector.load %arg5[%c0_8, %c0_9] : memref<64x64xbf16, #tpu.memory_space<vmem>>, vector<64x64xbf16>
    %cst_10 = arith.constant dense<0.000000e+00> : vector<8x64xf32>
    %10 = tpu.matmul %8, %9, %cst_10 {dimension_numbers = #tpu.dot_dimension_numbers<[1], [0], [0], [1], [0, 0, 1, 1], [], []>} : vector<8x64xbf16>, vector<64x64xbf16>, vector<8x64xf32> -> vector<8x64xf32>
    %11 = vector.shape_cast %10 : vector<8x64xf32> to vector<8x1x64xf32>
    %12 = vector.broadcast %11 : vector<8x1x64xf32> to vector<8x16x64xf32>
    %13 = arith.addf %7, %12 : vector<8x16x64xf32>
    %c0_11 = arith.constant 0 : index
    %c0_12 = arith.constant 0 : index
    %14 = vector.load %arg7[%c0_11, %c0_12] : memref<1x64xf32, #tpu.memory_space<vmem>>, vector<1x64xf32>
    %15 = vector.shape_cast %14 : vector<1x64xf32> to vector<1x1x64xf32>
    %16 = vector.broadcast %15 : vector<1x1x64xf32> to vector<8x16x64xf32>
    %17 = arith.addf %13, %16 : vector<8x16x64xf32>
    %18 = math.tanh %17 : vector<8x16x64xf32>
    %c0_13 = arith.constant 0 : index
    %c0_14 = arith.constant 0 : index
    %19 = vector.load %arg8[%c0_13, %c0_14] : memref<1x64xf32, #tpu.memory_space<vmem>>, vector<1x64xf32>
    %20 = vector.shape_cast %19 : vector<1x64xf32> to vector<1x1x64xf32>
    %21 = vector.broadcast %20 : vector<1x1x64xf32> to vector<8x16x64xf32>
    %22 = arith.mulf %18, %21 : vector<8x16x64xf32>
    %cst_15 = arith.constant dense<0.000000e+00> : vector<8x16xf32>
    %23 = vector.multi_reduction <add>, %22, %cst_15 [2] : vector<8x16x64xf32> to vector<8x16xf32>
    %cst_16 = arith.constant dense<0xFF800000> : vector<8xf32>
    %24 = vector.multi_reduction <maximumf>, %23, %cst_16 [1] : vector<8x16xf32> to vector<8xf32>
    %25 = vector.shape_cast %24 : vector<8xf32> to vector<8x1xf32>
    %26 = vector.broadcast %25 : vector<8x1xf32> to vector<8x16xf32>
    %27 = arith.subf %23, %26 : vector<8x16xf32>
    %28 = math.exp %27 : vector<8x16xf32>
    %cst_17 = arith.constant dense<0.000000e+00> : vector<8xf32>
    %29 = vector.multi_reduction <add>, %28, %cst_17 [1] : vector<8x16xf32> to vector<8xf32>
    %30 = vector.shape_cast %29 : vector<8xf32> to vector<8x1xf32>
    %31 = tpu.reciprocal %30 {approx = true} : vector<8x1xf32> -> vector<8x1xf32>
    %32 = vector.broadcast %31 : vector<8x1xf32> to vector<8x16xf32>
    %33 = arith.mulf %28, %32 : vector<8x16xf32>
    %34 = vector.shape_cast %33 : vector<8x16xf32> to vector<8x16x1xf32>
    %35 = vector.broadcast %34 : vector<8x16x1xf32> to vector<8x16x128xf32>
    %36 = arith.mulf %35, %3 : vector<8x16x128xf32>
    %cst_18 = arith.constant dense<0.000000e+00> : vector<8x128xf32>
    %37 = vector.multi_reduction <add>, %36, %cst_18 [1] : vector<8x16x128xf32> to vector<8x128xf32>
    %c0_19 = arith.constant 0 : index
    %c0_20 = arith.constant 0 : index
    %c0_21 = arith.constant 0 : index
    %38 = vector.load %arg1[%c0_19, %c0_20, %c0_21] : memref<8x8x64xbf16, #tpu.memory_space<vmem>>, vector<8x8x64xbf16>
    %39 = vector.shape_cast %38 : vector<8x8x64xbf16> to vector<64x64xbf16>
    %c0_22 = arith.constant 0 : index
    %c0_23 = arith.constant 0 : index
    %40 = vector.load %arg9[%c0_22, %c0_23] : memref<64x256xbf16, #tpu.memory_space<vmem>>, vector<64x256xbf16>
    %cst_24 = arith.constant dense<0.000000e+00> : vector<64x256xf32>
    %41 = tpu.matmul %39, %40, %cst_24 {dimension_numbers = #tpu.dot_dimension_numbers<[1], [0], [0], [1], [0, 0, 1, 1], [], []>} : vector<64x64xbf16>, vector<64x256xbf16>, vector<64x256xf32> -> vector<64x256xf32>
    %42 = vector.shape_cast %41 : vector<64x256xf32> to vector<8x8x256xf32>
    %43 = arith.truncf %37 : vector<8x128xf32> to vector<8x128xbf16>
    %c0_25 = arith.constant 0 : index
    %c0_26 = arith.constant 0 : index
    %44 = vector.load %arg10[%c0_25, %c0_26] : memref<128x256xbf16, #tpu.memory_space<vmem>>, vector<128x256xbf16>
    %cst_27 = arith.constant dense<0.000000e+00> : vector<8x256xf32>
    %45 = tpu.matmul %43, %44, %cst_27 {dimension_numbers = #tpu.dot_dimension_numbers<[1], [0], [0], [1], [0, 0, 1, 1], [], []>} : vector<8x128xbf16>, vector<128x256xbf16>, vector<8x256xf32> -> vector<8x256xf32>
    %c0_28 = arith.constant 0 : index
    %c0_29 = arith.constant 0 : index
    %46 = vector.load %arg12[%c0_28, %c0_29] : memref<1x256xf32, #tpu.memory_space<vmem>>, vector<1x256xf32>
    %47 = vector.broadcast %46 : vector<1x256xf32> to vector<8x256xf32>
    %48 = arith.addf %45, %47 : vector<8x256xf32>
    %49 = vector.shape_cast %48 : vector<8x256xf32> to vector<1x8x256xf32>
    %50 = vector.broadcast %49 : vector<1x8x256xf32> to vector<8x8x256xf32>
    %51 = arith.addf %42, %50 : vector<8x8x256xf32>
    %c0_30 = arith.constant 0 : index
    %c0_31 = arith.constant 0 : index
    %52 = vector.load %arg11[%c0_30, %c0_31] : memref<64x256xbf16, #tpu.memory_space<vmem>>, vector<64x256xbf16>
    %53 = vector.extract_strided_slice %51 {offsets = [0, 0, 0], sizes = [1, 8, 256], strides = [1, 1, 1]} : vector<8x8x256xf32> to vector<1x8x256xf32>
    %54 = vector.shape_cast %53 : vector<1x8x256xf32> to vector<8x256xf32>
    %55 = arith.truncf %0 : vector<8x64xf32> to vector<8x64xbf16>
    %cst_32 = arith.constant dense<0.000000e+00> : vector<8x256xf32>
    %56 = tpu.matmul %55, %52, %cst_32 {dimension_numbers = #tpu.dot_dimension_numbers<[1], [0], [0], [1], [0, 0, 1, 1], [], []>} : vector<8x64xbf16>, vector<64x256xbf16>, vector<8x256xf32> -> vector<8x256xf32>
    %57 = arith.addf %54, %56 : vector<8x256xf32>
    %58 = vector.extract_strided_slice %57 {offsets = [0, 0], sizes = [8, 64], strides = [1, 1]} : vector<8x256xf32> to vector<8x64xf32>
    %59 = arith.negf %58 : vector<8x64xf32>
    %60 = math.exp %59 : vector<8x64xf32>
    %cst_33 = arith.constant 1.000000e+00 : f32
    %61 = vector.broadcast %cst_33 : f32 to vector<8x64xf32>
    %62 = arith.addf %61, %60 : vector<8x64xf32>
    %63 = arith.divf %61, %62 : vector<8x64xf32>
    %64 = vector.extract_strided_slice %57 {offsets = [0, 64], sizes = [8, 64], strides = [1, 1]} : vector<8x256xf32> to vector<8x64xf32>
    %65 = arith.negf %64 : vector<8x64xf32>
    %66 = math.exp %65 : vector<8x64xf32>
    %cst_34 = arith.constant 1.000000e+00 : f32
    %67 = vector.broadcast %cst_34 : f32 to vector<8x64xf32>
    %68 = arith.addf %67, %66 : vector<8x64xf32>
    %69 = arith.divf %67, %68 : vector<8x64xf32>
    %70 = vector.extract_strided_slice %57 {offsets = [0, 128], sizes = [8, 64], strides = [1, 1]} : vector<8x256xf32> to vector<8x64xf32>
    %71 = math.tanh %70 : vector<8x64xf32>
    %72 = vector.extract_strided_slice %57 {offsets = [0, 192], sizes = [8, 64], strides = [1, 1]} : vector<8x256xf32> to vector<8x64xf32>
    %73 = arith.negf %72 : vector<8x64xf32>
    %74 = math.exp %73 : vector<8x64xf32>
    %cst_35 = arith.constant 1.000000e+00 : f32
    %75 = vector.broadcast %cst_35 : f32 to vector<8x64xf32>
    %76 = arith.addf %75, %74 : vector<8x64xf32>
    %77 = arith.divf %75, %76 : vector<8x64xf32>
    %78 = arith.mulf %69, %1 : vector<8x64xf32>
    %79 = arith.mulf %63, %71 : vector<8x64xf32>
    %80 = arith.addf %78, %79 : vector<8x64xf32>
    %81 = math.tanh %80 : vector<8x64xf32>
    %82 = arith.mulf %77, %81 : vector<8x64xf32>
    %c0_36 = arith.constant 0 : index
    %c0_37 = arith.constant 0 : index
    %c0_38 = arith.constant 0 : index
    %83 = vector.load %arg18[%c0_36, %c0_37, %c0_38] : memref<8x8x64xf32, #tpu.memory_space<vmem>>, vector<1x8x64xf32>
    %84 = vector.shape_cast %83 : vector<1x8x64xf32> to vector<8x64xf32>
    %85 = vector.shape_cast %82 : vector<8x64xf32> to vector<1x8x64xf32>
    tpu.vector_store %arg18[%c0_36, %c0_37, %c0_38], %85 {strides = array<i32>} : memref<8x8x64xf32, #tpu.memory_space<vmem>>, vector<1x8x64xf32>,
    %86 = vector.extract_strided_slice %51 {offsets = [1, 0, 0], sizes = [1, 8, 256], strides = [1, 1, 1]} : vector<8x8x256xf32> to vector<1x8x256xf32>
    %87 = vector.shape_cast %86 : vector<1x8x256xf32> to vector<8x256xf32>
    %88 = arith.truncf %82 : vector<8x64xf32> to vector<8x64xbf16>
    %cst_39 = arith.constant dense<0.000000e+00> : vector<8x256xf32>
    %89 = tpu.matmul %88, %52, %cst_39 {dimension_numbers = #tpu.dot_dimension_numbers<[1], [0], [0], [1], [0, 0, 1, 1], [], []>} : vector<8x64xbf16>, vector<64x256xbf16>, vector<8x256xf32> -> vector<8x256xf32>
    %90 = arith.addf %87, %89 : vector<8x256xf32>
    %91 = vector.extract_strided_slice %90 {offsets = [0, 0], sizes = [8, 64], strides = [1, 1]} : vector<8x256xf32> to vector<8x64xf32>
    %92 = arith.negf %91 : vector<8x64xf32>
    %93 = math.exp %92 : vector<8x64xf32>
    %cst_40 = arith.constant 1.000000e+00 : f32
    %94 = vector.broadcast %cst_40 : f32 to vector<8x64xf32>
    %95 = arith.addf %94, %93 : vector<8x64xf32>
    %96 = arith.divf %94, %95 : vector<8x64xf32>
    %97 = vector.extract_strided_slice %90 {offsets = [0, 64], sizes = [8, 64], strides = [1, 1]} : vector<8x256xf32> to vector<8x64xf32>
    %98 = arith.negf %97 : vector<8x64xf32>
    %99 = math.exp %98 : vector<8x64xf32>
    %cst_41 = arith.constant 1.000000e+00 : f32
    %100 = vector.broadcast %cst_41 : f32 to vector<8x64xf32>
    %101 = arith.addf %100, %99 : vector<8x64xf32>
    %102 = arith.divf %100, %101 : vector<8x64xf32>
    %103 = vector.extract_strided_slice %90 {offsets = [0, 128], sizes = [8, 64], strides = [1, 1]} : vector<8x256xf32> to vector<8x64xf32>
    %104 = math.tanh %103 : vector<8x64xf32>
    %105 = vector.extract_strided_slice %90 {offsets = [0, 192], sizes = [8, 64], strides = [1, 1]} : vector<8x256xf32> to vector<8x64xf32>
    %106 = arith.negf %105 : vector<8x64xf32>
    %107 = math.exp %106 : vector<8x64xf32>
    %cst_42 = arith.constant 1.000000e+00 : f32
    %108 = vector.broadcast %cst_42 : f32 to vector<8x64xf32>
    %109 = arith.addf %108, %107 : vector<8x64xf32>
    %110 = arith.divf %108, %109 : vector<8x64xf32>
    %111 = arith.mulf %102, %80 : vector<8x64xf32>
    %112 = arith.mulf %96, %104 : vector<8x64xf32>
    %113 = arith.addf %111, %112 : vector<8x64xf32>
    %114 = math.tanh %113 : vector<8x64xf32>
    %115 = arith.mulf %110, %114 : vector<8x64xf32>
    %c1 = arith.constant 1 : index
    %c0_43 = arith.constant 0 : index
    %c0_44 = arith.constant 0 : index
    %116 = vector.load %arg18[%c1, %c0_43, %c0_44] : memref<8x8x64xf32, #tpu.memory_space<vmem>>, vector<1x8x64xf32>
    %117 = vector.shape_cast %116 : vector<1x8x64xf32> to vector<8x64xf32>
    %118 = vector.shape_cast %115 : vector<8x64xf32> to vector<1x8x64xf32>
    tpu.vector_store %arg18[%c1, %c0_43, %c0_44], %118 {strides = array<i32>} : memref<8x8x64xf32, #tpu.memory_space<vmem>>, vector<1x8x64xf32>,
    %119 = vector.extract_strided_slice %51 {offsets = [2, 0, 0], sizes = [1, 8, 256], strides = [1, 1, 1]} : vector<8x8x256xf32> to vector<1x8x256xf32>
    %120 = vector.shape_cast %119 : vector<1x8x256xf32> to vector<8x256xf32>
    %121 = arith.truncf %115 : vector<8x64xf32> to vector<8x64xbf16>
    %cst_45 = arith.constant dense<0.000000e+00> : vector<8x256xf32>
    %122 = tpu.matmul %121, %52, %cst_45 {dimension_numbers = #tpu.dot_dimension_numbers<[1], [0], [0], [1], [0, 0, 1, 1], [], []>} : vector<8x64xbf16>, vector<64x256xbf16>, vector<8x256xf32> -> vector<8x256xf32>
    %123 = arith.addf %120, %122 : vector<8x256xf32>
    %124 = vector.extract_strided_slice %123 {offsets = [0, 0], sizes = [8, 64], strides = [1, 1]} : vector<8x256xf32> to vector<8x64xf32>
    %125 = arith.negf %124 : vector<8x64xf32>
    %126 = math.exp %125 : vector<8x64xf32>
    %cst_46 = arith.constant 1.000000e+00 : f32
    %127 = vector.broadcast %cst_46 : f32 to vector<8x64xf32>
    %128 = arith.addf %127, %126 : vector<8x64xf32>
    %129 = arith.divf %127, %128 : vector<8x64xf32>
    %130 = vector.extract_strided_slice %123 {offsets = [0, 64], sizes = [8, 64], strides = [1, 1]} : vector<8x256xf32> to vector<8x64xf32>
    %131 = arith.negf %130 : vector<8x64xf32>
    %132 = math.exp %131 : vector<8x64xf32>
    %cst_47 = arith.constant 1.000000e+00 : f32
    %133 = vector.broadcast %cst_47 : f32 to vector<8x64xf32>
    %134 = arith.addf %133, %132 : vector<8x64xf32>
    %135 = arith.divf %133, %134 : vector<8x64xf32>
    %136 = vector.extract_strided_slice %123 {offsets = [0, 128], sizes = [8, 64], strides = [1, 1]} : vector<8x256xf32> to vector<8x64xf32>
    %137 = math.tanh %136 : vector<8x64xf32>
    %138 = vector.extract_strided_slice %123 {offsets = [0, 192], sizes = [8, 64], strides = [1, 1]} : vector<8x256xf32> to vector<8x64xf32>
    %139 = arith.negf %138 : vector<8x64xf32>
    %140 = math.exp %139 : vector<8x64xf32>
    %cst_48 = arith.constant 1.000000e+00 : f32
    %141 = vector.broadcast %cst_48 : f32 to vector<8x64xf32>
    %142 = arith.addf %141, %140 : vector<8x64xf32>
    %143 = arith.divf %141, %142 : vector<8x64xf32>
    %144 = arith.mulf %135, %113 : vector<8x64xf32>
    %145 = arith.mulf %129, %137 : vector<8x64xf32>
    %146 = arith.addf %144, %145 : vector<8x64xf32>
    %147 = math.tanh %146 : vector<8x64xf32>
    %148 = arith.mulf %143, %147 : vector<8x64xf32>
    %c2 = arith.constant 2 : index
    %c0_49 = arith.constant 0 : index
    %c0_50 = arith.constant 0 : index
    %149 = vector.load %arg18[%c2, %c0_49, %c0_50] : memref<8x8x64xf32, #tpu.memory_space<vmem>>, vector<1x8x64xf32>
    %150 = vector.shape_cast %149 : vector<1x8x64xf32> to vector<8x64xf32>
    %151 = vector.shape_cast %148 : vector<8x64xf32> to vector<1x8x64xf32>
    tpu.vector_store %arg18[%c2, %c0_49, %c0_50], %151 {strides = array<i32>} : memref<8x8x64xf32, #tpu.memory_space<vmem>>, vector<1x8x64xf32>,
    %152 = vector.extract_strided_slice %51 {offsets = [3, 0, 0], sizes = [1, 8, 256], strides = [1, 1, 1]} : vector<8x8x256xf32> to vector<1x8x256xf32>
    %153 = vector.shape_cast %152 : vector<1x8x256xf32> to vector<8x256xf32>
    %154 = arith.truncf %148 : vector<8x64xf32> to vector<8x64xbf16>
    %cst_51 = arith.constant dense<0.000000e+00> : vector<8x256xf32>
    %155 = tpu.matmul %154, %52, %cst_51 {dimension_numbers = #tpu.dot_dimension_numbers<[1], [0], [0], [1], [0, 0, 1, 1], [], []>} : vector<8x64xbf16>, vector<64x256xbf16>, vector<8x256xf32> -> vector<8x256xf32>
    %156 = arith.addf %153, %155 : vector<8x256xf32>
    %157 = vector.extract_strided_slice %156 {offsets = [0, 0], sizes = [8, 64], strides = [1, 1]} : vector<8x256xf32> to vector<8x64xf32>
    %158 = arith.negf %157 : vector<8x64xf32>
    %159 = math.exp %158 : vector<8x64xf32>
    %cst_52 = arith.constant 1.000000e+00 : f32
    %160 = vector.broadcast %cst_52 : f32 to vector<8x64xf32>
    %161 = arith.addf %160, %159 : vector<8x64xf32>
    %162 = arith.divf %160, %161 : vector<8x64xf32>
    %163 = vector.extract_strided_slice %156 {offsets = [0, 64], sizes = [8, 64], strides = [1, 1]} : vector<8x256xf32> to vector<8x64xf32>
    %164 = arith.negf %163 : vector<8x64xf32>
    %165 = math.exp %164 : vector<8x64xf32>
    %cst_53 = arith.constant 1.000000e+00 : f32
    %166 = vector.broadcast %cst_53 : f32 to vector<8x64xf32>
    %167 = arith.addf %166, %165 : vector<8x64xf32>
    %168 = arith.divf %166, %167 : vector<8x64xf32>
    %169 = vector.extract_strided_slice %156 {offsets = [0, 128], sizes = [8, 64], strides = [1, 1]} : vector<8x256xf32> to vector<8x64xf32>
    %170 = math.tanh %169 : vector<8x64xf32>
    %171 = vector.extract_strided_slice %156 {offsets = [0, 192], sizes = [8, 64], strides = [1, 1]} : vector<8x256xf32> to vector<8x64xf32>
    %172 = arith.negf %171 : vector<8x64xf32>
    %173 = math.exp %172 : vector<8x64xf32>
    %cst_54 = arith.constant 1.000000e+00 : f32
    %174 = vector.broadcast %cst_54 : f32 to vector<8x64xf32>
    %175 = arith.addf %174, %173 : vector<8x64xf32>
    %176 = arith.divf %174, %175 : vector<8x64xf32>
    %177 = arith.mulf %168, %146 : vector<8x64xf32>
    %178 = arith.mulf %162, %170 : vector<8x64xf32>
    %179 = arith.addf %177, %178 : vector<8x64xf32>
    %180 = math.tanh %179 : vector<8x64xf32>
    %181 = arith.mulf %176, %180 : vector<8x64xf32>
    %c3 = arith.constant 3 : index
    %c0_55 = arith.constant 0 : index
    %c0_56 = arith.constant 0 : index
    %182 = vector.load %arg18[%c3, %c0_55, %c0_56] : memref<8x8x64xf32, #tpu.memory_space<vmem>>, vector<1x8x64xf32>
    %183 = vector.shape_cast %182 : vector<1x8x64xf32> to vector<8x64xf32>
    %184 = vector.shape_cast %181 : vector<8x64xf32> to vector<1x8x64xf32>
    tpu.vector_store %arg18[%c3, %c0_55, %c0_56], %184 {strides = array<i32>} : memref<8x8x64xf32, #tpu.memory_space<vmem>>, vector<1x8x64xf32>,
    %185 = vector.extract_strided_slice %51 {offsets = [4, 0, 0], sizes = [1, 8, 256], strides = [1, 1, 1]} : vector<8x8x256xf32> to vector<1x8x256xf32>
    %186 = vector.shape_cast %185 : vector<1x8x256xf32> to vector<8x256xf32>
    %187 = arith.truncf %181 : vector<8x64xf32> to vector<8x64xbf16>
    %cst_57 = arith.constant dense<0.000000e+00> : vector<8x256xf32>
    %188 = tpu.matmul %187, %52, %cst_57 {dimension_numbers = #tpu.dot_dimension_numbers<[1], [0], [0], [1], [0, 0, 1, 1], [], []>} : vector<8x64xbf16>, vector<64x256xbf16>, vector<8x256xf32> -> vector<8x256xf32>
    %189 = arith.addf %186, %188 : vector<8x256xf32>
    %190 = vector.extract_strided_slice %189 {offsets = [0, 0], sizes = [8, 64], strides = [1, 1]} : vector<8x256xf32> to vector<8x64xf32>
    %191 = arith.negf %190 : vector<8x64xf32>
    %192 = math.exp %191 : vector<8x64xf32>
    %cst_58 = arith.constant 1.000000e+00 : f32
    %193 = vector.broadcast %cst_58 : f32 to vector<8x64xf32>
    %194 = arith.addf %193, %192 : vector<8x64xf32>
    %195 = arith.divf %193, %194 : vector<8x64xf32>
    %196 = vector.extract_strided_slice %189 {offsets = [0, 64], sizes = [8, 64], strides = [1, 1]} : vector<8x256xf32> to vector<8x64xf32>
    %197 = arith.negf %196 : vector<8x64xf32>
    %198 = math.exp %197 : vector<8x64xf32>
    %cst_59 = arith.constant 1.000000e+00 : f32
    %199 = vector.broadcast %cst_59 : f32 to vector<8x64xf32>
    %200 = arith.addf %199, %198 : vector<8x64xf32>
    %201 = arith.divf %199, %200 : vector<8x64xf32>
    %202 = vector.extract_strided_slice %189 {offsets = [0, 128], sizes = [8, 64], strides = [1, 1]} : vector<8x256xf32> to vector<8x64xf32>
    %203 = math.tanh %202 : vector<8x64xf32>
    %204 = vector.extract_strided_slice %189 {offsets = [0, 192], sizes = [8, 64], strides = [1, 1]} : vector<8x256xf32> to vector<8x64xf32>
    %205 = arith.negf %204 : vector<8x64xf32>
    %206 = math.exp %205 : vector<8x64xf32>
    %cst_60 = arith.constant 1.000000e+00 : f32
    %207 = vector.broadcast %cst_60 : f32 to vector<8x64xf32>
    %208 = arith.addf %207, %206 : vector<8x64xf32>
    %209 = arith.divf %207, %208 : vector<8x64xf32>
    %210 = arith.mulf %201, %179 : vector<8x64xf32>
    %211 = arith.mulf %195, %203 : vector<8x64xf32>
    %212 = arith.addf %210, %211 : vector<8x64xf32>
    %213 = math.tanh %212 : vector<8x64xf32>
    %214 = arith.mulf %209, %213 : vector<8x64xf32>
    %c4 = arith.constant 4 : index
    %c0_61 = arith.constant 0 : index
    %c0_62 = arith.constant 0 : index
    %215 = vector.load %arg18[%c4, %c0_61, %c0_62] : memref<8x8x64xf32, #tpu.memory_space<vmem>>, vector<1x8x64xf32>
    %216 = vector.shape_cast %215 : vector<1x8x64xf32> to vector<8x64xf32>
    %217 = vector.shape_cast %214 : vector<8x64xf32> to vector<1x8x64xf32>
    tpu.vector_store %arg18[%c4, %c0_61, %c0_62], %217 {strides = array<i32>} : memref<8x8x64xf32, #tpu.memory_space<vmem>>, vector<1x8x64xf32>,
    %218 = vector.extract_strided_slice %51 {offsets = [5, 0, 0], sizes = [1, 8, 256], strides = [1, 1, 1]} : vector<8x8x256xf32> to vector<1x8x256xf32>
    %219 = vector.shape_cast %218 : vector<1x8x256xf32> to vector<8x256xf32>
    %220 = arith.truncf %214 : vector<8x64xf32> to vector<8x64xbf16>
    %cst_63 = arith.constant dense<0.000000e+00> : vector<8x256xf32>
    %221 = tpu.matmul %220, %52, %cst_63 {dimension_numbers = #tpu.dot_dimension_numbers<[1], [0], [0], [1], [0, 0, 1, 1], [], []>} : vector<8x64xbf16>, vector<64x256xbf16>, vector<8x256xf32> -> vector<8x256xf32>
    %222 = arith.addf %219, %221 : vector<8x256xf32>
    %223 = vector.extract_strided_slice %222 {offsets = [0, 0], sizes = [8, 64], strides = [1, 1]} : vector<8x256xf32> to vector<8x64xf32>
    %224 = arith.negf %223 : vector<8x64xf32>
    %225 = math.exp %224 : vector<8x64xf32>
    %cst_64 = arith.constant 1.000000e+00 : f32
    %226 = vector.broadcast %cst_64 : f32 to vector<8x64xf32>
    %227 = arith.addf %226, %225 : vector<8x64xf32>
    %228 = arith.divf %226, %227 : vector<8x64xf32>
    %229 = vector.extract_strided_slice %222 {offsets = [0, 64], sizes = [8, 64], strides = [1, 1]} : vector<8x256xf32> to vector<8x64xf32>
    %230 = arith.negf %229 : vector<8x64xf32>
    %231 = math.exp %230 : vector<8x64xf32>
    %cst_65 = arith.constant 1.000000e+00 : f32
    %232 = vector.broadcast %cst_65 : f32 to vector<8x64xf32>
    %233 = arith.addf %232, %231 : vector<8x64xf32>
    %234 = arith.divf %232, %233 : vector<8x64xf32>
    %235 = vector.extract_strided_slice %222 {offsets = [0, 128], sizes = [8, 64], strides = [1, 1]} : vector<8x256xf32> to vector<8x64xf32>
    %236 = math.tanh %235 : vector<8x64xf32>
    %237 = vector.extract_strided_slice %222 {offsets = [0, 192], sizes = [8, 64], strides = [1, 1]} : vector<8x256xf32> to vector<8x64xf32>
    %238 = arith.negf %237 : vector<8x64xf32>
    %239 = math.exp %238 : vector<8x64xf32>
    %cst_66 = arith.constant 1.000000e+00 : f32
    %240 = vector.broadcast %cst_66 : f32 to vector<8x64xf32>
    %241 = arith.addf %240, %239 : vector<8x64xf32>
    %242 = arith.divf %240, %241 : vector<8x64xf32>
    %243 = arith.mulf %234, %212 : vector<8x64xf32>
    %244 = arith.mulf %228, %236 : vector<8x64xf32>
    %245 = arith.addf %243, %244 : vector<8x64xf32>
    %246 = math.tanh %245 : vector<8x64xf32>
    %247 = arith.mulf %242, %246 : vector<8x64xf32>
    %c5 = arith.constant 5 : index
    %c0_67 = arith.constant 0 : index
    %c0_68 = arith.constant 0 : index
    %248 = vector.load %arg18[%c5, %c0_67, %c0_68] : memref<8x8x64xf32, #tpu.memory_space<vmem>>, vector<1x8x64xf32>
    %249 = vector.shape_cast %248 : vector<1x8x64xf32> to vector<8x64xf32>
    %250 = vector.shape_cast %247 : vector<8x64xf32> to vector<1x8x64xf32>
    tpu.vector_store %arg18[%c5, %c0_67, %c0_68], %250 {strides = array<i32>} : memref<8x8x64xf32, #tpu.memory_space<vmem>>, vector<1x8x64xf32>,
    %251 = vector.extract_strided_slice %51 {offsets = [6, 0, 0], sizes = [1, 8, 256], strides = [1, 1, 1]} : vector<8x8x256xf32> to vector<1x8x256xf32>
    %252 = vector.shape_cast %251 : vector<1x8x256xf32> to vector<8x256xf32>
    %253 = arith.truncf %247 : vector<8x64xf32> to vector<8x64xbf16>
    %cst_69 = arith.constant dense<0.000000e+00> : vector<8x256xf32>
    %254 = tpu.matmul %253, %52, %cst_69 {dimension_numbers = #tpu.dot_dimension_numbers<[1], [0], [0], [1], [0, 0, 1, 1], [], []>} : vector<8x64xbf16>, vector<64x256xbf16>, vector<8x256xf32> -> vector<8x256xf32>
    %255 = arith.addf %252, %254 : vector<8x256xf32>
    %256 = vector.extract_strided_slice %255 {offsets = [0, 0], sizes = [8, 64], strides = [1, 1]} : vector<8x256xf32> to vector<8x64xf32>
    %257 = arith.negf %256 : vector<8x64xf32>
    %258 = math.exp %257 : vector<8x64xf32>
    %cst_70 = arith.constant 1.000000e+00 : f32
    %259 = vector.broadcast %cst_70 : f32 to vector<8x64xf32>
    %260 = arith.addf %259, %258 : vector<8x64xf32>
    %261 = arith.divf %259, %260 : vector<8x64xf32>
    %262 = vector.extract_strided_slice %255 {offsets = [0, 64], sizes = [8, 64], strides = [1, 1]} : vector<8x256xf32> to vector<8x64xf32>
    %263 = arith.negf %262 : vector<8x64xf32>
    %264 = math.exp %263 : vector<8x64xf32>
    %cst_71 = arith.constant 1.000000e+00 : f32
    %265 = vector.broadcast %cst_71 : f32 to vector<8x64xf32>
    %266 = arith.addf %265, %264 : vector<8x64xf32>
    %267 = arith.divf %265, %266 : vector<8x64xf32>
    %268 = vector.extract_strided_slice %255 {offsets = [0, 128], sizes = [8, 64], strides = [1, 1]} : vector<8x256xf32> to vector<8x64xf32>
    %269 = math.tanh %268 : vector<8x64xf32>
    %270 = vector.extract_strided_slice %255 {offsets = [0, 192], sizes = [8, 64], strides = [1, 1]} : vector<8x256xf32> to vector<8x64xf32>
    %271 = arith.negf %270 : vector<8x64xf32>
    %272 = math.exp %271 : vector<8x64xf32>
    %cst_72 = arith.constant 1.000000e+00 : f32
    %273 = vector.broadcast %cst_72 : f32 to vector<8x64xf32>
    %274 = arith.addf %273, %272 : vector<8x64xf32>
    %275 = arith.divf %273, %274 : vector<8x64xf32>
    %276 = arith.mulf %267, %245 : vector<8x64xf32>
    %277 = arith.mulf %261, %269 : vector<8x64xf32>
    %278 = arith.addf %276, %277 : vector<8x64xf32>
    %279 = math.tanh %278 : vector<8x64xf32>
    %280 = arith.mulf %275, %279 : vector<8x64xf32>
    %c6 = arith.constant 6 : index
    %c0_73 = arith.constant 0 : index
    %c0_74 = arith.constant 0 : index
    %281 = vector.load %arg18[%c6, %c0_73, %c0_74] : memref<8x8x64xf32, #tpu.memory_space<vmem>>, vector<1x8x64xf32>
    %282 = vector.shape_cast %281 : vector<1x8x64xf32> to vector<8x64xf32>
    %283 = vector.shape_cast %280 : vector<8x64xf32> to vector<1x8x64xf32>
    tpu.vector_store %arg18[%c6, %c0_73, %c0_74], %283 {strides = array<i32>} : memref<8x8x64xf32, #tpu.memory_space<vmem>>, vector<1x8x64xf32>,
    %284 = vector.extract_strided_slice %51 {offsets = [7, 0, 0], sizes = [1, 8, 256], strides = [1, 1, 1]} : vector<8x8x256xf32> to vector<1x8x256xf32>
    %285 = vector.shape_cast %284 : vector<1x8x256xf32> to vector<8x256xf32>
    %286 = arith.truncf %280 : vector<8x64xf32> to vector<8x64xbf16>
    %cst_75 = arith.constant dense<0.000000e+00> : vector<8x256xf32>
    %287 = tpu.matmul %286, %52, %cst_75 {dimension_numbers = #tpu.dot_dimension_numbers<[1], [0], [0], [1], [0, 0, 1, 1], [], []>} : vector<8x64xbf16>, vector<64x256xbf16>, vector<8x256xf32> -> vector<8x256xf32>
    %288 = arith.addf %285, %287 : vector<8x256xf32>
    %289 = vector.extract_strided_slice %288 {offsets = [0, 0], sizes = [8, 64], strides = [1, 1]} : vector<8x256xf32> to vector<8x64xf32>
    %290 = arith.negf %289 : vector<8x64xf32>
    %291 = math.exp %290 : vector<8x64xf32>
    %cst_76 = arith.constant 1.000000e+00 : f32
    %292 = vector.broadcast %cst_76 : f32 to vector<8x64xf32>
    %293 = arith.addf %292, %291 : vector<8x64xf32>
    %294 = arith.divf %292, %293 : vector<8x64xf32>
    %295 = vector.extract_strided_slice %288 {offsets = [0, 64], sizes = [8, 64], strides = [1, 1]} : vector<8x256xf32> to vector<8x64xf32>
    %296 = arith.negf %295 : vector<8x64xf32>
    %297 = math.exp %296 : vector<8x64xf32>
    %cst_77 = arith.constant 1.000000e+00 : f32
    %298 = vector.broadcast %cst_77 : f32 to vector<8x64xf32>
    %299 = arith.addf %298, %297 : vector<8x64xf32>
    %300 = arith.divf %298, %299 : vector<8x64xf32>
    %301 = vector.extract_strided_slice %288 {offsets = [0, 128], sizes = [8, 64], strides = [1, 1]} : vector<8x256xf32> to vector<8x64xf32>
    %302 = math.tanh %301 : vector<8x64xf32>
    %303 = vector.extract_strided_slice %288 {offsets = [0, 192], sizes = [8, 64], strides = [1, 1]} : vector<8x256xf32> to vector<8x64xf32>
    %304 = arith.negf %303 : vector<8x64xf32>
    %305 = math.exp %304 : vector<8x64xf32>
    %cst_78 = arith.constant 1.000000e+00 : f32
    %306 = vector.broadcast %cst_78 : f32 to vector<8x64xf32>
    %307 = arith.addf %306, %305 : vector<8x64xf32>
    %308 = arith.divf %306, %307 : vector<8x64xf32>
    %309 = arith.mulf %300, %278 : vector<8x64xf32>
    %310 = arith.mulf %294, %302 : vector<8x64xf32>
    %311 = arith.addf %309, %310 : vector<8x64xf32>
    %312 = math.tanh %311 : vector<8x64xf32>
    %313 = arith.mulf %308, %312 : vector<8x64xf32>
    %c7 = arith.constant 7 : index
    %c0_79 = arith.constant 0 : index
    %c0_80 = arith.constant 0 : index
    %314 = vector.load %arg18[%c7, %c0_79, %c0_80] : memref<8x8x64xf32, #tpu.memory_space<vmem>>, vector<1x8x64xf32>
    %315 = vector.shape_cast %314 : vector<1x8x64xf32> to vector<8x64xf32>
    %316 = vector.shape_cast %313 : vector<8x64xf32> to vector<1x8x64xf32>
    tpu.vector_store %arg18[%c7, %c0_79, %c0_80], %316 {strides = array<i32>} : memref<8x8x64xf32, #tpu.memory_space<vmem>>, vector<1x8x64xf32>,
    %c0_81 = arith.constant 0 : index
    %c0_82 = arith.constant 0 : index
    %c0_83 = arith.constant 0 : index
    %317 = vector.load %arg18[%c0_81, %c0_82, %c0_83] : memref<8x8x64xf32, #tpu.memory_space<vmem>>, vector<8x8x64xf32>
    %318 = vector.shape_cast %317 : vector<8x8x64xf32> to vector<64x64xf32>
    %319 = arith.truncf %318 : vector<64x64xf32> to vector<64x64xbf16>
    %c0_84 = arith.constant 0 : index
    %c0_85 = arith.constant 0 : index
    %320 = vector.load %arg13[%c0_84, %c0_85] : memref<64x128xbf16, #tpu.memory_space<vmem>>, vector<64x128xbf16>
    %cst_86 = arith.constant dense<0.000000e+00> : vector<64x128xf32>
    %321 = tpu.matmul %319, %320, %cst_86 {dimension_numbers = #tpu.dot_dimension_numbers<[1], [0], [0], [1], [0, 0, 1, 1], [], []>} : vector<64x64xbf16>, vector<64x128xbf16>, vector<64x128xf32> -> vector<64x128xf32>
    %c0_87 = arith.constant 0 : index
    %c0_88 = arith.constant 0 : index
    %322 = vector.load %arg14[%c0_87, %c0_88] : memref<1x128xf32, #tpu.memory_space<vmem>>, vector<1x128xf32>
    %323 = vector.broadcast %322 : vector<1x128xf32> to vector<64x128xf32>
    %324 = arith.addf %321, %323 : vector<64x128xf32>
    %325 = vector.shape_cast %324 : vector<64x128xf32> to vector<8x8x128xf32>
    %c0_89 = arith.constant 0 : index
    %c0_90 = arith.constant 0 : index
    %c0_91 = arith.constant 0 : index
    %326 = vector.load %arg15[%c0_89, %c0_90, %c0_91] : memref<8x8x128xf32, #tpu.memory_space<vmem>>, vector<8x8x128xf32>
    tpu.vector_store %arg15[%c0_89, %c0_90, %c0_91], %325 {strides = array<i32>} : memref<8x8x128xf32, #tpu.memory_space<vmem>>, vector<8x8x128xf32>,
    %c0_92 = arith.constant 0 : index
    %c0_93 = arith.constant 0 : index
    %327 = vector.load %arg16[%c0_92, %c0_93] : memref<8x64xf32, #tpu.memory_space<vmem>>, vector<8x64xf32>
    tpu.vector_store %arg16[%c0_92, %c0_93], %313 {strides = array<i32>} : memref<8x64xf32, #tpu.memory_space<vmem>>, vector<8x64xf32>,
    %c0_94 = arith.constant 0 : index
    %c0_95 = arith.constant 0 : index
    %328 = vector.load %arg17[%c0_94, %c0_95] : memref<8x64xf32, #tpu.memory_space<vmem>>, vector<8x64xf32>
    tpu.vector_store %arg17[%c0_94, %c0_95], %311 {strides = array<i32>} : memref<8x64xf32, #tpu.memory_space<vmem>>, vector<8x64xf32>,
    return
  }
  func.func @transform_0(%arg0: i32) -> (i32, i32, i32) {
    %c0_i32 = arith.constant 0 : i32
    %c0_i32_0 = arith.constant 0 : i32
    %c0_i32_1 = arith.constant 0 : i32
    return %c0_i32, %arg0, %c0_i32_0 : i32, i32, i32
  }
  func.func @transform_1(%arg0: i32) -> (i32, i32, i32) {
    %c0_i32 = arith.constant 0 : i32
    %c0_i32_0 = arith.constant 0 : i32
    %c0_i32_1 = arith.constant 0 : i32
    return %arg0, %c0_i32, %c0_i32_0 : i32, i32, i32
  }
  func.func @transform_2(%arg0: i32) -> (i32, i32) {
    %c0_i32 = arith.constant 0 : i32
    %c0_i32_0 = arith.constant 0 : i32
    return %arg0, %c0_i32 : i32, i32
  }
  func.func @transform_3(%arg0: i32) -> (i32, i32) {
    %c0_i32 = arith.constant 0 : i32
    %c0_i32_0 = arith.constant 0 : i32
    return %arg0, %c0_i32 : i32, i32
  }
  func.func @transform_4(%arg0: i32) -> (i32, i32) {
    %c0_i32 = arith.constant 0 : i32
    %c0_i32_0 = arith.constant 0 : i32
    %c0_i32_1 = arith.constant 0 : i32
    return %c0_i32, %c0_i32_0 : i32, i32
  }
  func.func @transform_5(%arg0: i32) -> (i32, i32) {
    %c0_i32 = arith.constant 0 : i32
    %c0_i32_0 = arith.constant 0 : i32
    %c0_i32_1 = arith.constant 0 : i32
    return %c0_i32, %c0_i32_0 : i32, i32
  }
  func.func @transform_6(%arg0: i32) -> (i32, i32) {
    %c0_i32 = arith.constant 0 : i32
    %c0_i32_0 = arith.constant 0 : i32
    %c0_i32_1 = arith.constant 0 : i32
    return %c0_i32, %c0_i32_0 : i32, i32
  }
  func.func @transform_7(%arg0: i32) -> (i32, i32) {
    %c0_i32 = arith.constant 0 : i32
    %c0_i32_0 = arith.constant 0 : i32
    %c0_i32_1 = arith.constant 0 : i32
    return %c0_i32, %c0_i32_0 : i32, i32
  }
  func.func @transform_8(%arg0: i32) -> (i32, i32) {
    %c0_i32 = arith.constant 0 : i32
    %c0_i32_0 = arith.constant 0 : i32
    %c0_i32_1 = arith.constant 0 : i32
    return %c0_i32, %c0_i32_0 : i32, i32
  }
  func.func @transform_9(%arg0: i32) -> (i32, i32) {
    %c0_i32 = arith.constant 0 : i32
    %c0_i32_0 = arith.constant 0 : i32
    %c0_i32_1 = arith.constant 0 : i32
    return %c0_i32, %c0_i32_0 : i32, i32
  }
  func.func @transform_10(%arg0: i32) -> (i32, i32) {
    %c0_i32 = arith.constant 0 : i32
    %c0_i32_0 = arith.constant 0 : i32
    %c0_i32_1 = arith.constant 0 : i32
    return %c0_i32, %c0_i32_0 : i32, i32
  }
  func.func @transform_11(%arg0: i32) -> (i32, i32) {
    %c0_i32 = arith.constant 0 : i32
    %c0_i32_0 = arith.constant 0 : i32
    %c0_i32_1 = arith.constant 0 : i32
    return %c0_i32, %c0_i32_0 : i32, i32
  }
  func.func @transform_12(%arg0: i32) -> (i32, i32) {
    %c0_i32 = arith.constant 0 : i32
    %c0_i32_0 = arith.constant 0 : i32
    %c0_i32_1 = arith.constant 0 : i32
    return %c0_i32, %c0_i32_0 : i32, i32
  }
  func.func @transform_13(%arg0: i32) -> (i32, i32) {
    %c0_i32 = arith.constant 0 : i32
    %c0_i32_0 = arith.constant 0 : i32
    %c0_i32_1 = arith.constant 0 : i32
    return %c0_i32, %c0_i32_0 : i32, i32
  }
  func.func @transform_14(%arg0: i32) -> (i32, i32, i32) {
    %c0_i32 = arith.constant 0 : i32
    %c0_i32_0 = arith.constant 0 : i32
    %c0_i32_1 = arith.constant 0 : i32
    return %c0_i32, %arg0, %c0_i32_0 : i32, i32, i32
  }
  func.func @transform_15(%arg0: i32) -> (i32, i32) {
    %c0_i32 = arith.constant 0 : i32
    %c0_i32_0 = arith.constant 0 : i32
    return %arg0, %c0_i32 : i32, i32
  }
  func.func @transform_16(%arg0: i32) -> (i32, i32) {
    %c0_i32 = arith.constant 0 : i32
    %c0_i32_0 = arith.constant 0 : i32
    return %arg0, %c0_i32 : i32, i32
  }
}

</mosaic_0001>

<bundles_post_ra>
// kernel: tpu_custom_call.1
= control target key start
LH: loop header
LB: loop body
LE: loop exit
PB: predicated region body
PF: predicated region fallthrough
CT: control target
= control target key end

     0   :  { %s4168_s0 = inlined_call_operand.hbm [shape: bf16[8,8,64], index: 0, kind: input, shape index: {}]   ;;  %s4169_s1 = inlined_call_operand.hbm [shape: bf16[8,16,128], index: 1, kind: input, shape index: {}]   ;;  %s4170_s2 = inlined_call_operand.hbm [shape: f32[8,64], index: 2, kind: input, shape index: {}]   ;;  %s4171_s3 = inlined_call_operand.hbm [shape: f32[8,64], index: 3, kind: input, shape index: {}]   ;;  %s4172_s4 = inlined_call_operand.hbm [shape: bf16[64,64], index: 4, kind: input, shape index: {}]   ;;  %s4173_s5 = inlined_call_operand.vmem [shape: bf16[128,64], index: 5, kind: input, shape index: {}]   ;;  %s4174_s6 = inlined_call_operand.hbm [shape: f32[1,64], index: 6, kind: input, shape index: {}]   ;;  %s4175_s7 = inlined_call_operand.hbm [shape: f32[1,64], index: 7, kind: input, shape index: {}]   ;;  %s4176_s8 = inlined_call_operand.hbm [shape: bf16[64,256], index: 8, kind: input, shape index: {}]   ;;  %s4177_s9 = inlined_call_operand.vmem [shape: bf16[128,256], index: 9, kind: input, shape index: {}]   ;;  %s4178_s10 = inlined_call_operand.hbm [shape: bf16[64,256], index: 10, kind: input, shape index: {}]   ;;  %s4179_s11 = inlined_call_operand.vmem [shape: f32[1,256], index: 11, kind: input, shape index: {}]   ;;  %s4180_s12 = inlined_call_operand.hbm [shape: bf16[64,128], index: 12, kind: input, shape index: {}]   ;;  %s4181_s13 = inlined_call_operand.vmem [shape: f32[1,128], index: 13, kind: input, shape index: {}]   ;;  %s4182_s14 = inlined_call_operand.hbm [shape: f32[8,8,128], index: 14, kind: output, shape index: {0}]   ;;  %s4183_s15 = inlined_call_operand.hbm [shape: f32[8,64], index: 15, kind: output, shape index: {1}]   ;;  %s4184_s16 = inlined_call_operand.hbm [shape: f32[8,64], index: 16, kind: output, shape index: {2}]  }
   0x1   :  { %4188 = sst [smem:[#allocation32_spill]] %s4168_s0 }
   0x2   :  { %22 = vsyncpa [#allocation4], 0 }
   0x3   :  { %23 = vsyncpa [#allocation7], 0 }
   0x4   :  { %24 = vsyncpa [#allocation10], 0 }
   0x5   :  { %25 = vsyncpa [#allocation13], 0 }
   0x6   :  { %26 = vsyncpa [#allocation16], 0 }
   0x7   :  { %27 = vsyncpa [#allocation19], 0 }
   0x8   :  { %28 = vsyncpa [#allocation5], 0 }
   0x9   :  { %29 = vsyncpa [#allocation22], 0  ;;  %s3256_s21 = smov [#allocation6]   ;;  %s3257_s23 = smov [#allocation9]  }
   0xa   :  { %s47_s22 = sshll.u32 %s3256_s21, 4  ;;  %s70_s24 = sshll.u32 %s3257_s23, 4  ;;  %s48_s22 = int_to_ptr.vmem [resolvable:$true] %s47_s22  ;;  %s71_s24 = int_to_ptr.vmem [resolvable:$true] %s70_s24 }
   0xb   :  { %s2954_s27 = scalar_lea.hbm %s4169_s1, 1024 }
   0xc   :  { %p2955_p0 = scmp.ne.s32.totalorder %s4169_s1, %s2954_s27  ;;  %p2958_p1 = scmp.lt.u32.totalorder %s2954_s27, %s4169_s1 }
   0xe   :  { %p2960_p2 = pnand %p2958_p1, %p2955_p0 }
  0x10   :  { %2963 = shalt.err (!%p2960_p2)
}
  0x11   :  { %s2964_s17 = scalar_lea.vmem %s48_s22, 1024  ;;  %p2969_p4 = scmp.lt.s32.totalorder %s48_s22, %s48_s22 }
  0x12   :  { %p2965_p3 = scmp.ne.s32.totalorder %s48_s22, %s2964_s17  ;;  %p2970_p5 = scmp.lt.s32.totalorder %s2964_s17, %s2964_s17 }
  0x14   :  { %p2971_p6 = por %p2970_p5, %p2969_p4 }
  0x16   :  { %p2972_p7 = pnand %p2971_p6, %p2965_p3 }
  0x18   :  { %2975 = shalt.err (!%p2972_p7)
}
  0x19   :  { %s4186_s18 = smov 64   ;;  %s3259_s19 = smov 4  }
  0x1a   :  { %53 = dma.hbm_to_vmem [thread:$0]  %s4169_s1, 1024, %s48_s22, [#allocation7], %s4186_s18, %s4186_s18, %s3259_s19  }
  0x1b   :  { %s2976_s26 = scalar_lea.hbm %s4171_s3, 128 }
  0x1c   :  { %p2977_p8 = scmp.ne.s32.totalorder %s4171_s3, %s2976_s26  ;;  %p2980_p9 = scmp.lt.u32.totalorder %s2976_s26, %s4171_s3 }
  0x1e   :  { %p2982_p10 = pnand %p2980_p9, %p2977_p8 }
  0x20   :  { %2985 = shalt.err (!%p2982_p10)
}
  0x21   :  { %s2986_s0 = scalar_lea.vmem %s71_s24, 128  ;;  %p2991_p12 = scmp.lt.s32.totalorder %s71_s24, %s71_s24 }
  0x22   :  { %p2987_p11 = scmp.ne.s32.totalorder %s71_s24, %s2986_s0  ;;  %p2992_p13 = scmp.lt.s32.totalorder %s2986_s0, %s2986_s0 }
  0x24   :  { %p2993_p0 = por %p2992_p13, %p2991_p12 }
  0x26   :  { %p2994_p1 = pnand %p2993_p0, %p2987_p11 }
  0x28   :  { %2997 = shalt.err (!%p2994_p1)
}
  0x29   :  { %73 = dma.hbm_to_vmem [thread:$0]  %s4171_s3, 128, %s71_s24, [#allocation10]  }
  0x2a   :  { %s3260_s17 = smov [#allocation12]   ;;  %s3261_s21 = smov [#allocation15]  }
  0x2b   :  { %s94_s20 = sshll.u32 %s3260_s17, 4  ;;  %s113_s23 = sshll.u32 %s3261_s21, 4  ;;  %s95_s20 = int_to_ptr.vmem [resolvable:$true] %s94_s20  ;;  %s3389_s23 = int_to_ptr.vmem [resolvable:$true] %s113_s23 }
  0x2c   :  { %s2998_s27 = scalar_lea.hbm %s4174_s6, 16 }
  0x2d   :  { %p2999_p2 = scmp.ne.s32.totalorder %s4174_s6, %s2998_s27  ;;  %p3002_p3 = scmp.lt.u32.totalorder %s2998_s27, %s4174_s6 }
  0x2f   :  { %p3004_p4 = pnand %p3002_p3, %p2999_p2 }
  0x31   :  { %3007 = shalt.err (!%p3004_p4)
}
  0x32   :  { %s3008_s3 = scalar_lea.vmem %s95_s20, 16  ;;  %s3012_s24 = scalar_lea.vmem %s95_s20, 32 }
  0x33   :  { %p3009_p5 = scmp.ne.s32.totalorder %s95_s20, %s3008_s3  ;;  %p3013_p6 = scmp.lt.s32.totalorder %s95_s20, %s95_s20 }
  0x34   :  { %p3014_p7 = scmp.lt.s32.totalorder %s3012_s24, %s3008_s3 }
  0x36   :  { %p3015_p8 = por %p3014_p7, %p3013_p6 }
  0x38   :  { %p3016_p9 = pnand %p3015_p8, %p3009_p5 }
  0x3a   :  { %3019 = shalt.err (!%p3016_p9)
}
  0x3b   :  { %97 = dma.hbm_to_vmem [thread:$0]  %s4174_s6, 16, %s95_s20, [#allocation13]  }
  0x3c   :  { %s3020_s25 = scalar_lea.hbm %s4176_s8, 1024 }
  0x3d   :  { %p3021_p10 = scmp.ne.s32.totalorder %s4176_s8, %s3020_s25  ;;  %p3024_p11 = scmp.lt.u32.totalorder %s3020_s25, %s4176_s8 }
  0x3f   :  { %p3026_p12 = pnand %p3024_p11, %p3021_p10 }
  0x41   :  { %3029 = shalt.err (!%p3026_p12)
}
  0x42   :  { %s3030_s30 = scalar_lea.vmem %s3389_s23, 1024  ;;  %p3035_p0 = scmp.lt.s32.totalorder %s3389_s23, %s3389_s23 }
  0x43   :  { %p3031_p13 = scmp.ne.s32.totalorder %s3389_s23, %s3030_s30  ;;  %p3036_p1 = scmp.lt.s32.totalorder %s3030_s30, %s3030_s30 }
  0x45   :  { %p3037_p2 = por %p3036_p1, %p3035_p0 }
  0x47   :  { %p3038_p3 = pnand %p3037_p2, %p3031_p13 }
  0x49   :  { %3041 = shalt.err (!%p3038_p3)
}
  0x4a   :  { %s3262_s6 = smov 128   ;;  %s3263_s20 = smov 8  }
  0x4b   :  { %119 = dma.hbm_to_vmem [thread:$0]  %s4176_s8, 1024, %s3389_s23, [#allocation16], %s3262_s6, %s3262_s6, %s3263_s20  }
  0x4c   :  { %s3264_s24 = smov [#allocation3]   ;;  %s3265_s22 = smov [#allocation8]  }
  0x4d   :  { %s35_s1 = sshll.u32 %s3264_s24, 4  ;;  %s60_s17 = sshll.u32 %s3265_s22, 4  ;;  %s36_s1 = int_to_ptr.vmem [resolvable:$true] %s35_s1  ;;  %s61_s17 = int_to_ptr.vmem [resolvable:$true] %s60_s17 }
  0x4e   :  { %s4189_s26 = sld [smem:[#allocation32_spill]] }
  0x54   :  { %s3042_s27 = scalar_lea.hbm %s4189_s26, 512 }
  0x55   :  { %p3043_p4 = scmp.ne.s32.totalorder %s4189_s26, %s3042_s27  ;;  %p3046_p5 = scmp.lt.u32.totalorder %s3042_s27, %s4189_s26 }
  0x57   :  { %p3048_p6 = pnand %p3046_p5, %p3043_p4 }
  0x59   :  { %3051 = shalt.err (!%p3048_p6)
}
  0x5a   :  { %s3052_s8 = scalar_lea.vmem %s36_s1, 512  ;;  %p3057_p8 = scmp.lt.s32.totalorder %s36_s1, %s36_s1 }
  0x5b   :  { %p3053_p7 = scmp.ne.s32.totalorder %s36_s1, %s3052_s8  ;;  %p3058_p9 = scmp.lt.s32.totalorder %s3052_s8, %s3052_s8 }
  0x5d   :  { %p3059_p10 = por %p3058_p9, %p3057_p8 }
  0x5f   :  { %p3060_p11 = pnand %p3059_p10, %p3053_p7 }
  0x61   :  { %3063 = shalt.err (!%p3060_p11)
}
  0x62   :  { %s4190_s23 = smov 64   ;;  %s3064_s18 = scalar_lea.hbm %s4170_s2, 128 }
  0x63   :  { %41 = dma.hbm_to_vmem [thread:$0]  %s4189_s26, 512, %s36_s1, [#allocation4], %s4190_s23, %s4190_s23, %s3259_s19  }
  0x64   :  { %p3065_p12 = scmp.ne.s32.totalorder %s4170_s2, %s3064_s18  ;;  %p3068_p13 = scmp.lt.u32.totalorder %s3064_s18, %s4170_s2 }
  0x66   :  { %p3070_p0 = pnand %p3068_p13, %p3065_p12 }
  0x68   :  { %3073 = shalt.err (!%p3070_p0)
}
  0x69   :  { %s3074_s29 = scalar_lea.vmem %s61_s17, 128  ;;  %p3079_p2 = scmp.lt.s32.totalorder %s61_s17, %s61_s17 }
  0x6a   :  { %p3075_p1 = scmp.ne.s32.totalorder %s61_s17, %s3074_s29  ;;  %p3080_p3 = scmp.lt.s32.totalorder %s3074_s29, %s3074_s29 }
  0x6c   :  { %p3081_p4 = por %p3080_p3, %p3079_p2 }
  0x6e   :  { %p3082_p5 = pnand %p3081_p4, %p3075_p1 }
  0x70   :  { %3085 = shalt.err (!%p3082_p5)
}
  0x71   :  { %63 = dma.hbm_to_vmem [thread:$0]  %s4170_s2, 128, %s61_s17, [#allocation7]  }
  0x72   :  { %s3266_s30 = smov [#allocation11]   ;;  %s3267_s0 = smov [#allocation14]  }
  0x73   :  { %s79_s8 = sshll.u32 %s3266_s30, 4  ;;  %s104_s3 = sshll.u32 %s3267_s0, 4  ;;  %s80_s8 = int_to_ptr.vmem [resolvable:$true] %s79_s8  ;;  %s105_s3 = int_to_ptr.vmem [resolvable:$true] %s104_s3 }
  0x74   :  { %s3086_s18 = scalar_lea.hbm %s4172_s4, 512 }
  0x75   :  { %p3087_p6 = scmp.ne.s32.totalorder %s4172_s4, %s3086_s18  ;;  %p3090_p7 = scmp.lt.u32.totalorder %s3086_s18, %s4172_s4 }
  0x77   :  { %p3092_p8 = pnand %p3090_p7, %p3087_p6 }
  0x79   :  { %3095 = shalt.err (!%p3092_p8)
}
  0x7a   :  { %s3096_s2 = scalar_lea.vmem %s80_s8, 512  ;;  %p3101_p10 = scmp.lt.s32.totalorder %s80_s8, %s80_s8 }
  0x7b   :  { %p3097_p9 = scmp.ne.s32.totalorder %s80_s8, %s3096_s2  ;;  %p3102_p11 = scmp.lt.s32.totalorder %s3096_s2, %s3096_s2 }
  0x7d   :  { %p3103_p12 = por %p3102_p11, %p3101_p10 }
  0x7f   :  { %p3104_p13 = pnand %p3103_p12, %p3097_p9 }
  0x81   :  { %3107 = shalt.err (!%p3104_p13)
}
  0x82   :  { %85 = dma.hbm_to_vmem [thread:$0]  %s4172_s4, 512, %s80_s8, [#allocation10], %s4190_s23, %s4190_s23, %s3259_s19  }
  0x83   :  { %s3108_s30 = scalar_lea.hbm %s4175_s7, 16 }
  0x84   :  { %p3109_p0 = scmp.ne.s32.totalorder %s4175_s7, %s3108_s30  ;;  %p3112_p1 = scmp.lt.u32.totalorder %s3108_s30, %s4175_s7 }
  0x86   :  { %p3114_p2 = pnand %p3112_p1, %p3109_p0 }
  0x88   :  { %3117 = shalt.err (!%p3114_p2)
}
  0x89   :  { %s3118_s21 = scalar_lea.vmem %s105_s3, 16  ;;  %s3122_s25 = scalar_lea.vmem %s105_s3, 32 }
  0x8a   :  { %p3119_p3 = scmp.ne.s32.totalorder %s105_s3, %s3118_s21  ;;  %p3123_p4 = scmp.lt.s32.totalorder %s105_s3, %s105_s3 }
  0x8b   :  { %p3124_p5 = scmp.lt.s32.totalorder %s3122_s25, %s3118_s21 }
  0x8d   :  { %p3125_p6 = por %p3124_p5, %p3123_p4 }
  0x8f   :  { %p3126_p7 = pnand %p3125_p6, %p3119_p3 }
  0x91   :  { %3129 = shalt.err (!%p3126_p7)
}
  0x92   :  { %107 = dma.hbm_to_vmem [thread:$0]  %s4175_s7, 16, %s105_s3, [#allocation13]  }
  0x93   :  { %s3268_s27 = smov [#allocation17]   ;;  %s3269_s2 = smov [#allocation18]  }
  0x94   :  { %s127_s28 = sshll.u32 %s3268_s27, 4  ;;  %s141_s17 = sshll.u32 %s3269_s2, 4  ;;  %s128_s28 = int_to_ptr.vmem [resolvable:$true] %s127_s28  ;;  %s3477_s17 = int_to_ptr.vmem [resolvable:$true] %s141_s17 }
  0x95   :  { %s3130_s26 = scalar_lea.hbm %s4178_s10, 1024 }
  0x96   :  { %p3131_p8 = scmp.ne.s32.totalorder %s4178_s10, %s3130_s26  ;;  %p3134_p9 = scmp.lt.u32.totalorder %s3130_s26, %s4178_s10 }
  0x98   :  { %p3136_p10 = pnand %p3134_p9, %p3131_p8 }
  0x9a   :  { %3139 = shalt.err (!%p3136_p10)
}
  0x9b   :  { %s3140_s7 = scalar_lea.vmem %s128_s28, 1024  ;;  %p3145_p12 = scmp.lt.s32.totalorder %s128_s28, %s128_s28 }
  0x9c   :  { %p3141_p11 = scmp.ne.s32.totalorder %s128_s28, %s3140_s7  ;;  %p3146_p13 = scmp.lt.s32.totalorder %s3140_s7, %s3140_s7 }
  0x9e   :  { %p3147_p0 = por %p3146_p13, %p3145_p12 }
  0xa0   :  { %p3148_p1 = pnand %p3147_p0, %p3141_p11 }
  0xa2   :  { %3151 = shalt.err (!%p3148_p1)
}
  0xa3   :  { %133 = dma.hbm_to_vmem [thread:$0]  %s4178_s10, 1024, %s128_s28, [#allocation16], %s3262_s6, %s3262_s6, %s3263_s20  }
  0xa4   :  { %s3152_s4 = scalar_lea.hbm %s4180_s12, 512 }
  0xa5   :  { %p3153_p2 = scmp.ne.s32.totalorder %s4180_s12, %s3152_s4  ;;  %p3156_p3 = scmp.lt.u32.totalorder %s3152_s4, %s4180_s12 }
  0xa7   :  { %p3158_p4 = pnand %p3156_p3, %p3153_p2 }
  0xa9   :  { %3161 = shalt.err (!%p3158_p4)
}
  0xaa   :  { %s3162_s1 = scalar_lea.vmem %s3477_s17, 512  ;;  %p3167_p6 = scmp.lt.s32.totalorder %s3477_s17, %s3477_s17 }
  0xab   :  { %p3163_p5 = scmp.ne.s32.totalorder %s3477_s17, %s3162_s1  ;;  %p3168_p7 = scmp.lt.s32.totalorder %s3162_s1, %s3162_s1 }
  0xad   :  { %p3169_p8 = por %p3168_p7, %p3167_p6 }
  0xaf   :  { %p3170_p9 = pnand %p3169_p8, %p3163_p5 }
  0xb1   :  { %3173 = shalt.err (!%p3170_p9)
}
  0xb2   :  { %147 = dma.hbm_to_vmem [thread:$0]  %s4180_s12, 512, %s3477_s17, [#allocation19], %s4190_s23, %s4190_s23, %s3259_s19  }
  0xb3   :  { %3240 = dma.done.wait [#allocation4], 512  }
  0xb4   :  { %3241 = vsyncadd [#allocation4], 4294966784 }
  0xb5   :  { %3242 = dma.done.wait [#allocation7], 1152  }
  0xb6   :  { %3243 = vsyncadd [#allocation7], 4294966144 }
  0xb7   :  { %3244 = dma.done.wait [#allocation10], 640  }
  0xb8   :  { %3245 = vsyncadd [#allocation10], 4294966656 }
  0xb9   :  { %3246 = dma.done.wait [#allocation13], 32  }
  0xba   :  { %3247 = vsyncadd [#allocation13], 4294967264 }
  0xbb   :  { %3248 = dma.done.wait [#allocation16], 2048  }
  0xbc   :  { %3249 = vsyncadd [#allocation16], 4294965248 }
  0xbd   :  { %3250 = dma.done.wait [#allocation19], 512  }
  0xbe   :  { %3251 = vsyncadd [#allocation19], 4294966784  ;;  %v3270_v0 = vmov 0.0   ;;  %vm3271_vm0 = vmmov 0   ;;  %v2700_v1 = vld [vmem:[%s4173_s5] sm:$0xff]   ;;  %v2701_v2 = vld [vmem:[%s4173_s5 + $0x8] sm:$0xff]   ;;  %v506_v25 = vlaneseq }
  0xbf   :  { %2649 = vmatprep.subr.bf16.mxu1 %v3270_v0  ;;  %2657 = vmatprep.mubr.msk.bf16.mxu1 %vm3271_vm0, %v3270_v0  ;;  %v2703_v3 = vld [vmem:[#allocation11] sm:$0xff]   ;;  %v2705_v5 = vld [vmem:[#allocation11 + $0x8] sm:$0xff]   ;;  %v2707_v7 = vld [vmem:[#allocation11 + $0x10] sm:$0xff]   ;;  %vm457_vm1 = vcmask 523264   ;;  %v3272_v23 = vmov 1966171168  }
  0xc0   :  { %2617 = vmatprep.subr.bf16.mxu0 %v2700_v1  ;;  %v2702_v4 = vld [vmem:[%s4173_s5 + $0x10] sm:$0xff]   ;;  %2650 = vmatpush3.bf16.msra.mxu1 %v2703_v3  ;;  %v2704_v6 = vld [vmem:[%s4173_s5 + $0x18] sm:$0xff]   ;;  %v2706_v8 = vld [vmem:[%s4173_s5 + $0x20] sm:$0xff]   ;;  %v504_v24 = vunpack.c.l.s4 %v3272_v23  ;;  %v3543_v27 = vshrl.u32 %v506_v25, 7  ;;  %vm744_vm2 = vcmask 130112   ;;  %vm809_vm3 = vcmask 1041409  }
  0xc1   :  { %2618 = vmatpush3.bf16.msra.mxu0 %v2700_v1  ;;  %2651 = vmatprep.subr.bf16.mxu1 %v3270_v0  ;;  %v183_v9 = vld [vmem:[#allocation6] sm:$0xff]   ;;  %v2709_v10 = vld [vmem:[#allocation11 + $0x18] sm:$0xff]   ;;  %v2710_v14 = vld [vmem:[%s4173_s5 + $0x30] sm:$0xff]   ;;  %vm811_vm4 = vcmask 1042434   ;;  %vm813_vm5 = vcmask 1043459   ;;  %vm815_vm6 = vcmask 1044484  }
  0xc2   :  { %2619 = vmatprep.subr.bf16.mxu0 %v2701_v2  ;;  %v181_v11 = vld [vmem:[#allocation8] sm:$0xff]  ;;  %v2708_v12 = vld [vmem:[%s4173_s5 + $0x28] sm:$0xff]   ;;  %2633 = vmatprep.mubr.bf16.mxu0 %v183_v9  ;;  %v2711_v15 = vld [vmem:[%s4173_s5 + $0x38] sm:$0xff]   ;;  %v505_v26 = vunpack.c.0.s8 %v504_v24  ;;  %v3547_v36 = vsub.s32 0, %v3543_v27  ;;  %vm817_vm7 = vcmask 1045509   ;;  %vm819_vm8 = vcmask 1046534  }
  0xc3   :  { %v3532_v13 = vpack.c.bf16 %v181_v11, %v181_v11  ;;  %v185_v16 = vld [vmem:[#allocation6 + $0x8] sm:$0xff]   ;;  %v187_v17 = vld [vmem:[#allocation6 + $0x10] sm:$0xff]   ;;  %v189_v18 = vld [vmem:[#allocation6 + $0x18] sm:$0xff]   ;;  %vm821_vm9 = vcmask 1047559   ;;  %vm824_vm10 = vcmask 130048   ;;  %s3274_s0 = smov [#allocation21]  }
  0xc4   :  { %2652 = vmatpush3.bf16.msra.mxu1 %v2705_v5  ;;  %v191_v19 = vld [vmem:[#allocation6 + $0x20] sm:$0xff]   ;;  %v193_v20 = vld [vmem:[#allocation6 + $0x28] sm:$0xff]   ;;  %v195_v21 = vld [vmem:[#allocation6 + $0x30] sm:$0xff]   ;;  %v508_v28 = vsub.s32 %v505_v26, %v3543_v27  ;;  %s2461_s24 = sshll.u32 %s3274_s0, 4  ;;  %s2462_s24 = int_to_ptr.vmem [resolvable:$true] %s2461_s24 }
  0xc5   :  { %2620 = vmatpush3.bf16.msra.mxu0 %v2701_v2  ;;  %2653 = vmatprep.subr.bf16.mxu1 %v3270_v0  ;;  %v197_v22 = vld [vmem:[#allocation6 + $0x38] sm:$0xff]   ;;  %v3551_v42 = vld [vmem:[#allocation12] ss:$0 sm:$0xff]  ;;  %v3562_v9 = vld [vmem:[#allocation14] ss:$0 sm:$0xff]  ;;  %s3174_s22 = scalar_lea.vmem %s2462_s24, 128  ;;  %p3179_p11 = scmp.lt.s32.totalorder %s2462_s24, %s2462_s24 }
  0xc6   :  { %2621 = vmatprep.subr.bf16.mxu0 %v2702_v4  ;;  %p3175_p10 = scmp.ne.s32.totalorder %s2462_s24, %s3174_s22  ;;  %p3180_p12 = scmp.lt.s32.totalorder %s3174_s22, %s3174_s22 }
  0xc8   :  { %2654 = vmatpush3.bf16.msra.mxu1 %v2707_v7  ;;  %p3181_p13 = por %p3180_p12, %p3179_p11 }
  0xc9   :  { %2622 = vmatpush3.bf16.msra.mxu0 %v2702_v4  ;;  %2655 = vmatprep.subr.bf16.mxu1 %v3270_v0 }
  0xca   :  { %2623 = vmatprep.subr.bf16.mxu0 %v2704_v6  ;;  %p3182_p0 = pnand %p3181_p13, %p3175_p10 }
  0xcc   :  { %2656 = vmatpush3.bf16.msra.mxu1 %v2709_v10 }
  0xcd   :  { %2624 = vmatpush3.bf16.msra.mxu0 %v2704_v6 }
  0xce   :  { %2625 = vmatprep.subr.bf16.mxu0 %v2706_v8 }
  0xcf   :  { %2658 = vmatmul.mubr.msk.bf16.vlgmr.msra.gmra.mrb[0].mxu1 %vm457_vm1, %v3532_v13 }
  0xd1   :  { %2626 = vmatpush3.bf16.msra.mxu0 %v2706_v8 }
  0xd2   :  { %2627 = vmatprep.subr.bf16.mxu0 %v2708_v12 }
  0xd5   :  { %2628 = vmatpush3.bf16.msra.mxu0 %v2708_v12 }
  0xd6   :  { %2629 = vmatprep.subr.bf16.mxu0 %v2710_v14 }
  0xd9   :  { %2630 = vmatpush3.bf16.msra.mxu0 %v2710_v14 }
  0xda   :  { %2631 = vmatprep.subr.bf16.mxu0 %v2711_v15 }
  0xdd   :  { %2632 = vmatpush3.bf16.msra.mxu0 %v2711_v15 }
  0xe0   :  { %2634 = vmatmul.mubr.bf16.vlgmr.msra.gmra.mrb[0].mxu0 %v185_v16 }
  0xe1   :  { %2637 = vmatprep.mubr.bf16.mxu0 %v187_v17 }
  0xe8   :  { %2638 = vmatmul.mubr.bf16.gmra.mrb[4].mxu0 %v189_v18 }
  0xe9   :  { %2641 = vmatprep.mubr.bf16.mxu0 %v191_v19 }
  0xf0   :  { %2642 = vmatmul.mubr.bf16.gmra.mrb[8].mxu0 %v193_v20 }
  0xf1   :  { %2645 = vmatprep.mubr.bf16.mxu0 %v195_v21 }
  0xf8   :  { %2646 = vmatmul.mubr.bf16.gmra.mrb[12].mxu0 %v197_v22 }
 0x1a2   :  { %v495_v29 = vpop.f32.mrb[0].mxu1 }
 0x1a3   :  { %v509_v30 = vrot.slane %v495_v29, %v508_v28  ;;  %v2659_v31 = vpop.f32.mrb[1].mxu1  ;;  %v502_v40 = vcombine.high %v495_v29, %v495_v29 }
 0x1a4   :  { %v498_v32 = vpop.f32.mrb[2].mxu1 }
 0x1a5   :  { %v517_v33 = vcombine.high %v509_v30, %v509_v30  ;;  %v2660_v34 = vpop.f32.mrb[3].mxu1  ;;  %v525_v37 = vrot.slane %v509_v30, %v508_v28  ;;  %v516_v47 = vrot.slane %v502_v40, %v508_v28 }
 0x1a7   :  { %v539_v35 = vrot.slane %v517_v33, %v508_v28  ;;  %v554_v39 = vrot.slane %v525_v37, %v3547_v36  ;;  %v547_v54 = vcombine.high %v525_v37, %v525_v37  ;;  %v518_v57 = vcombine.high %v516_v47, %v516_v47 }
 0x1a8   :  { %v532_v7 = vrot.slane %v516_v47, %v508_v28 }
 0x1a9   :  { %v558_v38 = vrot.slane %v539_v35, %v3547_v36  ;;  %v549_v51 = vcombine.high %v539_v35, %v539_v35  ;;  %v562_v60 = vrot.slane %v547_v54, %v3547_v36  ;;  %v546_v4 = vrot.slane %v518_v57, %v508_v28 }
 0x1aa   :  { %v570_v16 = vrot.slane %v532_v7, %v3547_v36 }
 0x1ab   :  { %v566_v58 = vrot.slane %v549_v51, %v3547_v36  ;;  %v574_v12 = vrot.slane %v546_v4, %v3547_v36  ;;  %v550_v29 = vcombine.high %v546_v4, %v546_v4 }
 0x1b3   :  { %v2635_v41 = vpop.f32.mrb[0].mxu0 }
 0x1b4   :  { %v593_v43 = vadd.f32 %v2635_v41, %v558_v38  ;;  %v361_v44 = vpop.f32.mrb[1].mxu0 }
 0x1b5   :  { %v591_v45 = vadd.f32 %v554_v39, %v361_v44  ;;  %v2636_v46 = vpop.f32.mrb[2].mxu0  ;;  %v582_v44 = vrot.slane %v550_v29, %v3547_v36 }
 0x1b6   :  { %v616_v48 = vadd.f32 %v3551_v42, %v593_v43  ;;  %v594_v49 = vadd.f32 %v2636_v46, %v558_v38  ;;  %v364_v50 = vpop.f32.mrb[3].mxu0  ;;  %v548_v38 = vcombine.high %v532_v7, %v532_v7 }
 0x1b7   :  { %v614_v52 = vadd.f32 %v3551_v42, %v591_v45  ;;  %v592_v53 = vadd.f32 %v554_v39, %v364_v50 }
 0x1b8   :  { %2784 = vtanh.f32 %v616_v48  ;;  %v617_v55 = vadd.f32 %v3551_v42, %v594_v49  ;;  %v578_v48 = vrot.slane %v548_v38, %v3547_v36  ;;  %v734_v38 = vand.u32 127, %v506_v25 }
 0x1b9   :  { %2786 = vtanh.f32 %v614_v52  ;;  %v615_v56 = vadd.f32 %v3551_v42, %v592_v53 }
 0x1ba   :  { %2788 = vtanh.f32 %v617_v55 }
 0x1bb   :  { %2790 = vtanh.f32 %v615_v56  ;;  %v2639_v59 = vpop.f32.mrb[4].mxu0 }
 0x1bc   :  { %v597_v61 = vadd.f32 %v2639_v59, %v566_v58  ;;  %v377_v62 = vpop.f32.mrb[5].mxu0 }
 0x1bd   :  { %v595_v63 = vadd.f32 %v562_v60, %v377_v62  ;;  %v2640_v0 = vpop.f32.mrb[6].mxu0 }
 0x1be   :  { %v620_v1 = vadd.f32 %v3551_v42, %v597_v61  ;;  %v598_v2 = vadd.f32 %v2640_v0, %v566_v58  ;;  %v380_v3 = vpop.f32.mrb[7].mxu0 }
 0x1bf   :  { %v618_v5 = vadd.f32 %v3551_v42, %v595_v63  ;;  %v596_v6 = vadd.f32 %v562_v60, %v380_v3 }
 0x1c0   :  { %2792 = vtanh.f32 %v620_v1  ;;  %v621_v8 = vadd.f32 %v3551_v42, %v598_v2 }
 0x1c1   :  { %2794 = vtanh.f32 %v618_v5  ;;  %v619_v10 = vadd.f32 %v3551_v42, %v596_v6 }
 0x1c2   :  { %v2785_v11 = vpop.eup %2784  ;;  %2796 = vtanh.f32 %v621_v8 }
 0x1c3   :  { %v2787_v14 = vpop.eup %2786  ;;  %2798 = vtanh.f32 %v619_v10  ;;  %v2643_v15 = vpop.f32.mrb[8].mxu0  ;;  %v655_v17 = vmul.f32 %v2785_v11, %v3562_v9 }
 0x1c4   :  { %v2789_v18 = vpop.eup %2788  ;;  %v601_v19 = vadd.f32 %v2643_v15, %v574_v12  ;;  %v393_v20 = vpop.f32.mrb[9].mxu0  ;;  %v653_v21 = vmul.f32 %v2787_v14, %v3562_v9 }
 0x1c5   :  { %v2791_v22 = vpop.eup %2790  ;;  %v599_v23 = vadd.f32 %v570_v16, %v393_v20  ;;  %v2644_v24 = vpop.f32.mrb[10].mxu0  ;;  %v675_v26 = vsel %vm457_vm1, %v655_v17, 0.0  ;;  %v656_v28 = vmul.f32 %v2789_v18, %v3562_v9 }
 0x1c6   :  { %v624_v30 = vadd.f32 %v3551_v42, %v601_v19  ;;  %v602_v31 = vadd.f32 %v2644_v24, %v574_v12  ;;  %v396_v32 = vpop.f32.mrb[11].mxu0  ;;  %676 = vadd.xlane.f32.xlu1 %v675_v26  ;;  %v669_v33 = vsel %vm457_vm1, %v653_v21, 0.0  ;;  %v654_v34 = vmul.f32 %v2791_v22, %v3562_v9 }
 0x1c7   :  { %v622_v35 = vadd.f32 %v3551_v42, %v599_v23  ;;  %v600_v37 = vadd.f32 %v570_v16, %v396_v32  ;;  %670 = vadd.xlane.f32.xlu0 %v669_v33  ;;  %v678_v41 = vsel %vm457_vm1, %v656_v28, 0.0 }
 0x1c8   :  { %2800 = vtanh.f32 %v624_v30  ;;  %v625_v39 = vadd.f32 %v3551_v42, %v602_v31  ;;  %v672_v45 = vsel %vm457_vm1, %v654_v34, 0.0 }
 0x1c9   :  { %2802 = vtanh.f32 %v622_v35  ;;  %v623_v40 = vadd.f32 %v3551_v42, %v600_v37 }
 0x1ca   :  { %v2793_v43 = vpop.eup %2792  ;;  %2804 = vtanh.f32 %v625_v39  ;;  %679 = vadd.xlane.f32.xlu1 %v678_v41 }
 0x1cb   :  { %v2795_v46 = vpop.eup %2794  ;;  %2806 = vtanh.f32 %v623_v40  ;;  %v2647_v47 = vpop.f32.mrb[12].mxu0  ;;  %673 = vadd.xlane.f32.xlu0 %v672_v45  ;;  %v659_v49 = vmul.f32 %v2793_v43, %v3562_v9  ;;  %v3630_v45 = vsub.s32 %v734_v38, %v3543_v27 }
 0x1cc   :  { %v2797_v50 = vpop.eup %2796  ;;  %v605_v51 = vadd.f32 %v2647_v47, %v582_v44  ;;  %v409_v52 = vpop.f32.mrb[13].mxu0  ;;  %v657_v61 = vmul.f32 %v2795_v46, %v3562_v9 }
 0x1cd   :  { %v2799_v53 = vpop.eup %2798  ;;  %v603_v54 = vadd.f32 %v578_v48, %v409_v52  ;;  %v2648_v55 = vpop.f32.mrb[14].mxu0  ;;  %v687_v56 = vsel %vm457_vm1, %v659_v49, 0.0  ;;  %v660_v57 = vmul.f32 %v2797_v50, %v3562_v9 }
 0x1ce   :  { %v628_v58 = vadd.f32 %v3551_v42, %v605_v51  ;;  %v606_v59 = vadd.f32 %v2648_v55, %v582_v44  ;;  %v412_v60 = vpop.f32.mrb[15].mxu0  ;;  %v658_v1 = vmul.f32 %v2799_v53, %v3562_v9  ;;  %v681_v5 = vsel %vm457_vm1, %v657_v61, 0.0 }
 0x1cf   :  { %v626_v62 = vadd.f32 %v3551_v42, %v603_v54  ;;  %v604_v63 = vadd.f32 %v578_v48, %v412_v60  ;;  %688 = vadd.xlane.f32.xlu0 %v687_v56  ;;  %v690_v0 = vsel %vm457_vm1, %v660_v57, 0.0 }
 0x1d0   :  { %2808 = vtanh.f32 %v628_v58  ;;  %v629_v2 = vadd.f32 %v3551_v42, %v606_v59  ;;  %691 = vadd.xlane.f32.xlu1 %v690_v0  ;;  %v684_v7 = vsel %vm457_vm1, %v658_v1, 0.0 }
 0x1d1   :  { %2810 = vtanh.f32 %v626_v62  ;;  %v627_v3 = vadd.f32 %v3551_v42, %v604_v63 }
 0x1d2   :  { %v2801_v4 = vpop.eup %2800  ;;  %2812 = vtanh.f32 %v629_v2 }
 0x1d3   :  { %v2803_v6 = vpop.eup %2802  ;;  %2814 = vtanh.f32 %v627_v3  ;;  %682 = vadd.xlane.f32.xlu0 %v681_v5  ;;  %v663_v8 = vmul.f32 %v2801_v4, %v3562_v9 }
 0x1d4   :  { %v2805_v10 = vpop.eup %2804  ;;  %685 = vadd.xlane.f32.xlu1 %v684_v7  ;;  %v661_v42 = vmul.f32 %v2803_v6, %v3562_v9 }
 0x1d5   :  { %v2807_v11 = vpop.eup %2806  ;;  %v699_v12 = vsel %vm457_vm1, %v663_v8, 0.0  ;;  %v664_v14 = vmul.f32 %v2805_v10, %v3562_v9 }
 0x1d6   :  { %v662_v16 = vmul.f32 %v2807_v11, %v3562_v9  ;;  %v693_v18 = vsel %vm457_vm1, %v661_v42, 0.0 }
 0x1d7   :  { %700 = vadd.xlane.f32.xlu0 %v699_v12  ;;  %v702_v15 = vsel %vm457_vm1, %v664_v14, 0.0 }
 0x1d8   :  { %703 = vadd.xlane.f32.xlu1 %v702_v15  ;;  %v696_v20 = vsel %vm457_vm1, %v662_v16, 0.0 }
 0x1da   :  { %v2809_v17 = vpop.eup %2808 }
 0x1db   :  { %v2811_v19 = vpop.eup %2810  ;;  %694 = vadd.xlane.f32.xlu0 %v693_v18  ;;  %v667_v28 = vmul.f32 %v2809_v17, %v3562_v9 }
 0x1dc   :  { %v2813_v21 = vpop.eup %2812  ;;  %697 = vadd.xlane.f32.xlu1 %v696_v20  ;;  %v665_v22 = vmul.f32 %v2811_v19, %v3562_v9 }
 0x1dd   :  { %v2815_v23 = vpop.eup %2814  ;;  %v668_v30 = vmul.f32 %v2813_v21, %v3562_v9  ;;  %v711_v31 = vsel %vm457_vm1, %v667_v28, 0.0 }
 0x1de   :  { %v705_v24 = vsel %vm457_vm1, %v665_v22, 0.0  ;;  %v666_v26 = vmul.f32 %v2815_v23, %v3562_v9  ;;  %v739_v9 = vadd.s32 4294967288, %v734_v38  ;;  %v3273_v22 = vmov 0  }
 0x1df   :  { %706 = vadd.xlane.f32.xlu0 %v705_v24  ;;  %v714_v32 = vsel %vm457_vm1, %v668_v30, 0.0  ;;  %2698 = vset.pattern.permute.xlu1 %v3273_v22  ;;  %v3701_v23 = vsub.s32 1, %v3543_v27 }
 0x1e0   :  { %v708_v29 = vsel %vm457_vm1, %v666_v26, 0.0  ;;  %v3625_v43 = vsub.s32 %v739_v9, %v3543_v27  ;;  %2699 = vset.pattern.permute.xlu0 %v3273_v22  ;;  %1394 = vmatprep.mubr.bf16.mxu1 %v3273_v22  ;;  %v855_v9 = vsub.s32 6, %v3543_v27 }
 0x1e1   :  { %709 = vadd.xlane.f32.xlu1 %v708_v29  ;;  %1608 = vmatprep.mubr.bf16.mxu0 %v3273_v22  ;;  %v851_v29 = vsub.s32 5, %v3543_v27 }
 0x1e3   :  { %712 = vadd.xlane.f32.xlu0 %v711_v31 }
 0x1e5   :  { %715 = vadd.xlane.f32.xlu1 %v714_v32  ;;  %v839_v32 = vsub.s32 2, %v3543_v27 }
 0x253   :  { %v3609_v33 = vpop.xlane.xlu1 %676 }
 0x254   :  { %v3611_v34 = vpop.xlane.xlu0 %670  ;;  %v749_v51 = vrot.slane %v3609_v33, %v3630_v45 }
 0x255   :  { %v738_v52 = vrot.slane %v3611_v34, %v3630_v45 }
 0x257   :  { %v3615_v37 = vpop.xlane.xlu1 %679 }
 0x258   :  { %v3613_v35 = vpop.xlane.xlu0 %673  ;;  %v753_v25 = vrot.slane %v3615_v37, %v3625_v43 }
 0x259   :  { %v743_v47 = vrot.slane %v3613_v35, %v3625_v43 }
 0x25a   :  { %v754_v54 = vsel %vm744_vm2, %v753_v25, %v749_v51 }
 0x25b   :  { %v745_v55 = vsel %vm744_vm2, %v743_v47, %v738_v52 }
 0x25c   :  { %v3618_v39 = vpop.xlane.xlu0 %688  ;;  %v810_v62 = vsel %vm809_vm3, %v754_v54, %v745_v55  ;;  %v843_v54 = vsub.s32 3, %v3543_v27 }
 0x25d   :  { %v3620_v40 = vpop.xlane.xlu1 %691  ;;  %v767_v60 = vrot.slane %v3618_v39, %v3630_v45 }
 0x25e   :  { %v771_v61 = vrot.slane %v3620_v40, %v3625_v43 }
 0x260   :  { %v3622_v41 = vpop.xlane.xlu0 %682  ;;  %v772_v3 = vsel %vm744_vm2, %v771_v61, %v767_v60 }
 0x261   :  { %v3627_v44 = vpop.xlane.xlu1 %685  ;;  %v758_v49 = vrot.slane %v3622_v41, %v3630_v45 }
 0x262   :  { %v762_v50 = vrot.slane %v3627_v44, %v3625_v43 }
 0x264   :  { %v3632_v46 = vpop.xlane.xlu0 %700  ;;  %v763_v57 = vsel %vm744_vm2, %v762_v50, %v758_v49 }
 0x265   :  { %v3638_v48 = vpop.xlane.xlu1 %703  ;;  %v812_v0 = vsel %vm811_vm4, %v763_v57, %v810_v62  ;;  %v785_v4 = vrot.slane %v3632_v46, %v3630_v45 }
 0x266   :  { %v789_v5 = vrot.slane %v3638_v48, %v3625_v43  ;;  %v814_v10 = vsel %vm813_vm5, %v772_v3, %v812_v0 }
 0x268   :  { %v3648_v53 = vpop.xlane.xlu0 %694  ;;  %v790_v42 = vsel %vm744_vm2, %v789_v5, %v785_v4 }
 0x269   :  { %v3652_v56 = vpop.xlane.xlu1 %697  ;;  %v776_v58 = vrot.slane %v3648_v53, %v3630_v45 }
 0x26a   :  { %v780_v59 = vrot.slane %v3652_v56, %v3625_v43 }
 0x26c   :  { %v3664_v63 = vpop.xlane.xlu0 %706  ;;  %v781_v1 = vsel %vm744_vm2, %v780_v59, %v776_v58 }
 0x26d   :  { %v794_v7 = vrot.slane %v3664_v63, %v3630_v45  ;;  %v816_v11 = vsel %vm815_vm6, %v781_v1, %v814_v10 }
 0x26e   :  { %v3668_v2 = vpop.xlane.xlu1 %709  ;;  %v818_v17 = vsel %vm817_vm7, %v790_v42, %v816_v11 }
 0x26f   :  { %v798_v6 = vrot.slane %v3668_v2, %v3625_v43 }
 0x270   :  { %v3679_v8 = vpop.xlane.xlu0 %712 }
 0x271   :  { %v799_v14 = vsel %vm744_vm2, %v798_v6, %v794_v7  ;;  %v803_v15 = vrot.slane %v3679_v8, %v3630_v45 }
 0x272   :  { %v3683_v12 = vpop.xlane.xlu1 %715  ;;  %v820_v19 = vsel %vm819_vm8, %v799_v14, %v818_v17 }
 0x273   :  { %v807_v16 = vrot.slane %v3683_v12, %v3625_v43 }
 0x275   :  { %v808_v18 = vsel %vm744_vm2, %v807_v16, %v803_v15 }
 0x276   :  { %v822_v20 = vsel %vm821_vm9, %v808_v18, %v820_v19 }
 0x277   :  { %v825_v21 = vsel %vm824_vm10, %v822_v20, -inf }
 0x278   :  { %826 = vmax.xlane.f32.xlu0 %v825_v21 }
 0x305   :  { %v827_v24 = vpop.xlane.xlu0 %826 }
 0x306   :  { %v832_v26 = vrot.slane %v827_v24, %v3547_v36  ;;  %v836_v28 = vrot.slane %v827_v24, %v3701_v23  ;;  %v3713_v25 = vrot.slane %v827_v24, %v851_v29  ;;  %v840_v50 = vrot.slane %v827_v24, %v839_v32 }
 0x307   :  { %v844_v60 = vrot.slane %v827_v24, %v843_v54 }
 0x308   :  { %v869_v30 = vsub.f32 %v3611_v34, %v832_v26  ;;  %v870_v31 = vsub.f32 %v3613_v35, %v832_v26  ;;  %v871_v38 = vsub.f32 %v3609_v33, %v836_v28  ;;  %v872_v51 = vsub.f32 %v3615_v37, %v836_v28 }
 0x309   :  { %v859_v35 = vsub.s32 7, %v3543_v27  ;;  %v3721_v33 = vrot.slane %v827_v24, %v855_v9  ;;  %v879_v52 = vsub.f32 %v3632_v46, %v3713_v25  ;;  %v873_v55 = vsub.f32 %v3622_v41, %v840_v50 }
 0x30a   :  { %v885_v47 = vmul.f32 1.442695, %v869_v30  ;;  %v887_v49 = vmul.f32 1.442695, %v870_v31  ;;  %v889_v34 = vmul.f32 1.442695, %v871_v38  ;;  %v874_v61 = vsub.f32 %v3627_v44, %v840_v50 }
 0x30b   :  { %v891_v57 = vmul.f32 1.442695, %v872_v51  ;;  %v860_v37 = vrot.slane %v827_v24, %v859_v35  ;;  %v881_v58 = vsub.f32 %v3664_v63, %v3721_v33  ;;  %v905_v59 = vmul.f32 1.442695, %v879_v52 }
 0x30c   :  { %2816 = vpow2.f32 %v885_v47  ;;  %v893_v46 = vmul.f32 1.442695, %v873_v55  ;;  %v847_v63 = vsub.s32 4, %v3543_v27  ;;  %v875_v3 = vsub.f32 %v3618_v39, %v844_v60  ;;  %v2726_v27 = vld [vmem:[#allocation15 + $0x20] ss:$8 sps:$4 sm:$0xff]  }
 0x30d   :  { %2818 = vpow2.f32 %v887_v49  ;;  %v883_v41 = vsub.f32 %v3679_v8, %v860_v37  ;;  %v909_v0 = vmul.f32 1.442695, %v881_v58  ;;  %v895_v4 = vmul.f32 1.442695, %v874_v61 }
 0x30e   :  { %2820 = vpow2.f32 %v889_v34  ;;  %v848_v6 = vrot.slane %v827_v24, %v847_v63  ;;  %v876_v7 = vsub.f32 %v3620_v40, %v844_v60  ;;  %v897_v8 = vmul.f32 1.442695, %v875_v3 }
 0x30f   :  { %2822 = vpow2.f32 %v891_v57  ;;  %v913_v5 = vmul.f32 1.442695, %v883_v41  ;;  %v880_v18 = vsub.f32 %v3638_v48, %v3713_v25  ;;  %v884_v26 = vsub.f32 %v3683_v12, %v860_v37 }
 0x310   :  { %2824 = vpow2.f32 %v905_v59  ;;  %v877_v11 = vsub.f32 %v3648_v53, %v848_v6  ;;  %v899_v14 = vmul.f32 1.442695, %v876_v7  ;;  %v878_v15 = vsub.f32 %v3652_v56, %v848_v6 }
 0x311   :  { %2826 = vpow2.f32 %v893_v46  ;;  %v882_v56 = vsub.f32 %v3668_v2, %v3721_v33  ;;  %v907_v21 = vmul.f32 1.442695, %v880_v18  ;;  %v915_v30 = vmul.f32 1.442695, %v884_v26 }
 0x312   :  { %2828 = vpow2.f32 %v909_v0  ;;  %v901_v16 = vmul.f32 1.442695, %v877_v11  ;;  %v903_v19 = vmul.f32 1.442695, %v878_v15 }
 0x313   :  { %2830 = vpow2.f32 %v895_v4  ;;  %v911_v48 = vmul.f32 1.442695, %v882_v56 }
 0x314   :  { %2832 = vpow2.f32 %v913_v5 }
 0x315   :  { %2834 = vpow2.f32 %v897_v8 }
 0x316   :  { %v3734_v62 = vpop.eup %2816  ;;  %2836 = vpow2.f32 %v899_v14 }
 0x317   :  { %v3737_v1 = vpop.eup %2818  ;;  %934 = vperm.xlu1 %2698, %v3734_v62   ;;  %2838 = vpow2.f32 %v901_v16 }
 0x318   :  { %937 = vperm.xlu0 %2699, %v3737_v1   ;;  %v3743_v44 = vpop.eup %2820  ;;  %2840 = vpow2.f32 %v903_v19 }
 0x319   :  { %v3749_v10 = vpop.eup %2822  ;;  %2842 = vpow2.f32 %v907_v21 }
 0x31a   :  { %v3752_v39 = vpop.eup %2824  ;;  %2844 = vpow2.f32 %v911_v48 }
 0x31b   :  { %940 = vperm.xlu1 %2698, %v3743_v44   ;;  %v3756_v42 = vpop.eup %2826  ;;  %2846 = vpow2.f32 %v915_v30 }
 0x31c   :  { %964 = vperm.xlu0 %2699, %v3752_v39   ;;  %v3759_v40 = vpop.eup %2828 }
 0x31d   :  { %v3763_v17 = vpop.eup %2830 }
 0x31e   :  { %v3766_v53 = vpop.eup %2832 }
 0x31f   :  { %943 = vperm.xlu1 %2698, %v3749_v10   ;;  %v3771_v20 = vpop.eup %2834 }
 0x320   :  { %970 = vperm.xlu0 %2699, %v3759_v40   ;;  %v3776_v24 = vpop.eup %2836 }
 0x321   :  { %v3780_v28 = vpop.eup %2838 }
 0x322   :  { %v3783_v31 = vpop.eup %2840 }
 0x323   :  { %946 = vperm.xlu1 %2698, %v3756_v42   ;;  %v3786_v2 = vpop.eup %2842 }
 0x324   :  { %976 = vperm.xlu0 %2699, %v3766_v53   ;;  %v3789_v38 = vpop.eup %2844 }
 0x325   :  { %v3792_v12 = vpop.eup %2846 }
 0x327   :  { %949 = vperm.xlu1 %2698, %v3763_v17  }
 0x32b   :  { %952 = vperm.xlu1 %2698, %v3771_v20  }
 0x32f   :  { %955 = vperm.xlu1 %2698, %v3776_v24  }
 0x333   :  { %958 = vperm.xlu1 %2698, %v3780_v28  }
 0x337   :  { %961 = vperm.xlu1 %2698, %v3783_v31  }
 0x33b   :  { %967 = vperm.xlu1 %2698, %v3786_v2  }
 0x33f   :  { %973 = vperm.xlu1 %2698, %v3789_v38  }
 0x343   :  { %979 = vperm.xlu1 %2698, %v3792_v12  }
 0x396   :  { %v935_v25 = vpop.permute.xlu1 %934 }
 0x397   :  { %v938_v33 = vpop.permute.xlu0 %937  ;;  %v984_v41 = vrot.slane %v935_v25, %v3630_v45 }
 0x398   :  { %v988_v46 = vrot.slane %v938_v33, %v3625_v43 }
 0x39a   :  { %v941_v47 = vpop.permute.xlu1 %940  ;;  %v989_v16 = vsel %vm744_vm2, %v988_v46, %v984_v41 }
 0x39b   :  { %v965_v57 = vpop.permute.xlu0 %964  ;;  %v993_v0 = vrot.slane %v941_v47, %v3630_v45 }
 0x39c   :  { %v1029_v18 = vrot.slane %v965_v57, %v3630_v45 }
 0x39e   :  { %v944_v49 = vpop.permute.xlu1 %943 }
 0x39f   :  { %v997_v58 = vrot.slane %v944_v49, %v3625_v43  ;;  %v971_v59 = vpop.permute.xlu0 %970 }
 0x3a0   :  { %v1038_v21 = vrot.slane %v971_v59, %v3630_v45 }
 0x3a1   :  { %v998_v6 = vsel %vm744_vm2, %v997_v58, %v993_v0 }
 0x3a2   :  { %v947_v50 = vpop.permute.xlu1 %946  ;;  %v1053_v26 = vsel %vm809_vm3, %v998_v6, %v989_v16  ;;  %v3870_v16 = vld [vmem:[#allocation17 + $0x4] ss:$8 sps:$4 sm:$0xff]  }
 0x3a3   :  { %v1002_v4 = vrot.slane %v947_v50, %v3630_v45  ;;  %v977_v48 = vpop.permute.xlu0 %976 }
 0x3a6   :  { %v950_v51 = vpop.permute.xlu1 %949 }
 0x3a7   :  { %v1006_v60 = vrot.slane %v950_v51, %v3625_v43 }
 0x3a9   :  { %v1007_v11 = vsel %vm744_vm2, %v1006_v60, %v1002_v4 }
 0x3aa   :  { %v953_v34 = vpop.permute.xlu1 %952  ;;  %v1054_v25 = vsel %vm811_vm4, %v1007_v11, %v1053_v26  ;;  %v2734_v11 = vld [vmem:[%s4177_s9 + $0x4] ss:$8 sps:$4 sm:$0xff]   ;;  %v2748_v26 = vld [vmem:[%s4177_s9 + $0x34] ss:$8 sps:$4 sm:$0xff]  }
 0x3ab   :  { %v1011_v7 = vrot.slane %v953_v34, %v3630_v45  ;;  %v1047_v34 = vrot.slane %v977_v48, %v3630_v45  ;;  %1576 = vmatprep.subr.bf16.mxu0 %v2734_v11  ;;  %v2746_v48 = vld [vmem:[%s4177_s9 + $0x30] ss:$8 sps:$4 sm:$0xff]  }
 0x3ae   :  { %v956_v52 = vpop.permute.xlu1 %955 }
 0x3af   :  { %v1015_v3 = vrot.slane %v956_v52, %v3625_v43 }
 0x3b1   :  { %v1016_v19 = vsel %vm744_vm2, %v1015_v3, %v1011_v7 }
 0x3b2   :  { %v959_v55 = vpop.permute.xlu1 %958  ;;  %v1055_v49 = vsel %vm813_vm5, %v1016_v19, %v1054_v25  ;;  %v2744_v19 = vld [vmem:[%s4177_s9 + $0x24] ss:$8 sps:$4 sm:$0xff]  }
 0x3b3   :  { %v1020_v14 = vrot.slane %v959_v55, %v3630_v45  ;;  %v3893_v25 = vld [vmem:[#allocation17 + $0x10] ss:$8 sps:$4 sm:$0xff]  }
 0x3b6   :  { %v962_v37 = vpop.permute.xlu1 %961 }
 0x3b7   :  { %v1024_v5 = vrot.slane %v962_v37, %v3625_v43 }
 0x3b9   :  { %v1025_v30 = vsel %vm744_vm2, %v1024_v5, %v1020_v14  ;;  %v2735_v14 = vld [vmem:[#allocation3] sm:$0xff]  }
 0x3ba   :  { %v968_v61 = vpop.permute.xlu1 %967  ;;  %v1056_v33 = vsel %vm815_vm6, %v1025_v30, %v1055_v49  ;;  %v3891_v30 = vld [vmem:[#allocation17 + $0x14] ss:$8 sps:$4 sm:$0xff]   ;;  %v2754_v49 = vld [vmem:[%s4177_s9 + $0x44] ss:$8 sps:$4 sm:$0xff]  }
 0x3bb   :  { %v1033_v8 = vrot.slane %v968_v61, %v3625_v43 }
 0x3bd   :  { %v1034_v47 = vsel %vm744_vm2, %v1033_v8, %v1029_v18  ;;  %v2723_v8 = vld [vmem:[#allocation15 + $0x10] ss:$8 sps:$4 sm:$0xff]   ;;  %v3873_v18 = vld [vmem:[#allocation17] ss:$8 sps:$4 sm:$0xff]  }
 0x3be   :  { %v974_v15 = vpop.permute.xlu1 %973  ;;  %v1057_v55 = vsel %vm817_vm7, %v1034_v47, %v1056_v33  ;;  %v2752_v47 = vld [vmem:[%s4177_s9 + $0x40] ss:$8 sps:$4 sm:$0xff]   ;;  %v3908_v33 = vld [vmem:[#allocation17 + $0x20] ss:$8 sps:$4 sm:$0xff]  }
 0x3bf   :  { %v1042_v56 = vrot.slane %v974_v15, %v3625_v43  ;;  %v2738_v15 = vld [vmem:[%s4177_s9 + $0x14] ss:$8 sps:$4 sm:$0xff]  }
 0x3c1   :  { %v1043_v50 = vsel %vm744_vm2, %v1042_v56, %v1038_v21  ;;  %v2742_v56 = vld [vmem:[%s4177_s9 + $0x20] ss:$8 sps:$4 sm:$0xff]  }
 0x3c2   :  { %v980_v51 = vpop.permute.xlu1 %979  ;;  %v1058_v37 = vsel %vm819_vm8, %v1043_v50, %v1057_v55  ;;  %v2745_v21 = vld [vmem:[#allocation3 + $0x8] sm:$0xff]   ;;  %v2755_v50 = vld [vmem:[#allocation3 + $0x10] sm:$0xff]  }
 0x3c3   :  { %v1051_v52 = vrot.slane %v980_v51, %v3625_v43  ;;  %v2758_v51 = vld [vmem:[%s4177_s9 + $0x54] ss:$8 sps:$4 sm:$0xff]   ;;  %v2756_v55 = vld [vmem:[%s4177_s9 + $0x50] ss:$8 sps:$4 sm:$0xff]  }
 0x3c5   :  { %v1052_v57 = vsel %vm744_vm2, %v1051_v52, %v1047_v34  ;;  %v3905_v34 = vld [vmem:[#allocation17 + $0x24] ss:$8 sps:$4 sm:$0xff]   ;;  %v3911_v52 = vld [vmem:[#allocation17 + $0x34] ss:$8 sps:$4 sm:$0xff]  }
 0x3c6   :  { %v1059_v58 = vsel %vm821_vm9, %v1052_v57, %v1058_v37  ;;  %v182_v57 = vld [vmem:[#allocation9] sm:$0xff] }
 0x3c7   :  { %v1061_v59 = vsel %vm824_vm10, %v1059_v58, 0.0  ;;  %v2764_v37 = vld [vmem:[%s4177_s9 + $0x64] ss:$8 sps:$4 sm:$0xff]  }
 0x3c8   :  { %1062 = vadd.xlane.f32.xlu0 %v1061_v59  ;;  %v3922_v58 = vld [vmem:[#allocation17 + $0x30] ss:$8 sps:$4 sm:$0xff]   ;;  %v2762_v59 = vld [vmem:[%s4177_s9 + $0x60] ss:$8 sps:$4 sm:$0xff]  }
 0x455   :  { %v1063_v60 = vpop.xlane.xlu0 %1062 }
 0x456   :  { %2848 = vrcp.f32 %v1063_v60  ;;  %v2765_v60 = vld [vmem:[#allocation3 + $0x18] sm:$0xff]  }
 0x460   :  { %v2849_v61 = vpop.eup %2848 }
 0x461   :  { %v1085_v45 = vrot.slane %v2849_v61, %v847_v63  ;;  %v1069_v46 = vrot.slane %v2849_v61, %v3547_v36  ;;  %v1097_v0 = vrot.slane %v2849_v61, %v859_v35  ;;  %v1073_v5 = vrot.slane %v2849_v61, %v3701_v23 }
 0x463   :  { %v1114_v43 = vmul.f32 %v3780_v28, %v1085_v45  ;;  %v1106_v41 = vmul.f32 %v3734_v62, %v1069_v46  ;;  %v1120_v3 = vmul.f32 %v3766_v53, %v1097_v0  ;;  %v1107_v4 = vmul.f32 %v3737_v1, %v1069_v46 }
 0x464   :  { %v1108_v63 = vmul.f32 %v3743_v44, %v1073_v5  ;;  %v1109_v28 = vmul.f32 %v3749_v10, %v1073_v5  ;;  %v1077_v62 = vrot.slane %v2849_v61, %v839_v32  ;;  %v1081_v1 = vrot.slane %v2849_v61, %v843_v54 }
 0x465   :  { %1164 = vperm.xlu0 %2699, %v1114_v43   ;;  %1124 = vperm.xlu1 %2698, %v1106_v41   ;;  %v1115_v10 = vmul.f32 %v3783_v31, %v1085_v45  ;;  %v1089_v32 = vrot.slane %v2849_v61, %v851_v29  ;;  %v1093_v54 = vrot.slane %v2849_v61, %v855_v9  ;;  %v2725_v31 = vld [vmem:[#allocation15 + $0x14] ss:$8 sps:$4 sm:$0xff]   ;;  %v2768_v61 = vld [vmem:[%s4177_s9 + $0x74] ss:$8 sps:$4 sm:$0xff]  }
 0x466   :  { %v1110_v35 = vmul.f32 %v3756_v42, %v1077_v62  ;;  %v1111_v53 = vmul.f32 %v3763_v17, %v1077_v62  ;;  %v1112_v6 = vmul.f32 %v3771_v20, %v1081_v1  ;;  %v1113_v44 = vmul.f32 %v3776_v24, %v1081_v1  ;;  %v2722_v20 = vld [vmem:[#allocation15 + $0x4] ss:$8 sps:$4 sm:$0xff]   ;;  %v2720_v24 = vld [vmem:[#allocation15] ss:$8 sps:$4 sm:$0xff]   ;;  %v2731_v9 = vld [vmem:[#allocation15 + $0x34] ss:$8 sps:$4 sm:$0xff]  }
 0x467   :  { %v1116_v42 = vmul.f32 %v3752_v39, %v1089_v32  ;;  %v1117_v17 = vmul.f32 %v3786_v2, %v1089_v32  ;;  %v1118_v7 = vmul.f32 %v3759_v40, %v1093_v54  ;;  %1362 = vmatprep.subr.bf16.mxu1 %v2722_v20  ;;  %v1119_v29 = vmul.f32 %v3789_v38, %v1093_v54  ;;  %v2728_v39 = vld [vmem:[#allocation15 + $0x24] ss:$8 sps:$4 sm:$0xff]   ;;  %v2729_v40 = vld [vmem:[#allocation15 + $0x30] ss:$8 sps:$4 sm:$0xff]   ;;  %v2948_v62 = vld [vmem:[#allocation6 + $0x10] sm:$0xff]  }
 0x468   :  { %1363 = vmatpush1.bf16.msra.mxu1 %v2720_v24  ;;  %v1121_v2 = vmul.f32 %v3792_v12, %v1097_v0  ;;  %v2732_v38 = vld [vmem:[%s4177_s9] ss:$8 sps:$4 sm:$0xff]   ;;  %v2736_v12 = vld [vmem:[%s4177_s9 + $0x10] ss:$8 sps:$4 sm:$0xff]   ;;  %v203_v32 = vunpack.c.l.bf16 %v2948_v62 }
 0x469   :  { %1194 = vperm.xlu0 %2699, %v1120_v3   ;;  %1129 = vperm.xlu1 %2698, %v1107_v4   ;;  %v2766_v45 = vld [vmem:[%s4177_s9 + $0x70] ss:$8 sps:$4 sm:$0xff]   ;;  %v2946_v4 = vld [vmem:[#allocation6 + $0x8] sm:$0xff]   ;;  %v2950_v24 = vld [vmem:[#allocation6 + $0x20] sm:$0xff]  }
 0x46a   :  { %1364 = vmatprep.subr.bf16.mxu1 %v2725_v31  ;;  %1577 = vmatpush1.bf16.msra.mxu0 %v2732_v38  ;;  %v202_v5 = vunpack.c.h.bf16 %v2946_v4  ;;  %v201_v1 = vunpack.c.l.bf16 %v2946_v4  ;;  %v207_v31 = vunpack.c.l.bf16 %v2950_v24 }
 0x46b   :  { %1578 = vmatprep.subr.bf16.mxu0 %v2738_v15 }
 0x46c   :  { %1365 = vmatpush1.bf16.msra.mxu1 %v2723_v8 }
 0x46d   :  { %1134 = vperm.xlu1 %2698, %v1108_v63   ;;  %1366 = vmatprep.subr.bf16.mxu1 %v2728_v39  ;;  %v2947_v63 = vld [vmem:[#allocation6] sm:$0xff]   ;;  %v208_v39 = vunpack.c.h.bf16 %v2950_v24 }
 0x46e   :  { %1579 = vmatpush1.bf16.msra.mxu0 %v2736_v12  ;;  %1738 = vrot.lane.b32.xlu0 %v182_v57, %s4190_s23 }
 0x46f   :  { %1580 = vmatprep.subr.bf16.mxu0 %v2744_v19 }
 0x470   :  { %1367 = vmatpush1.bf16.msra.mxu1 %v2726_v27 }
 0x471   :  { %1139 = vperm.xlu1 %2698, %v1109_v28   ;;  %1368 = vmatprep.subr.bf16.mxu1 %v2731_v9  ;;  %v200_v28 = vunpack.c.h.bf16 %v2947_v63 }
 0x472   :  { %1581 = vmatpush1.bf16.msra.mxu0 %v2742_v56 }
 0x473   :  { %1582 = vmatprep.subr.bf16.mxu0 %v2748_v26 }
 0x474   :  { %1369 = vmatpush1.bf16.msra.mxu1 %v2729_v40 }
 0x475   :  { %1144 = vperm.xlu1 %2698, %v1110_v35   ;;  %1681 = vmatprep.subr.bf16.mxu1 %v3870_v16  ;;  %v204_v35 = vunpack.c.h.bf16 %v2948_v62 }
 0x476   :  { %1583 = vmatpush1.bf16.msra.mxu0 %v2746_v48 }
 0x477   :  { %2527 = vmatmul.mubr.msk.bf16.vlgmr.msra.gmra.mrb[4].mxu1 %vm457_vm1, %v2735_v14  ;;  %1584 = vmatprep.subr.bf16.mxu0 %v2754_v49 }
 0x478   :  { %1404 = vmatprep.mubr.bf16.mxu1 %v3273_v22  ;;  %1682 = vmatpush1.bf16.msra.mxu1 %v3873_v18 }
 0x479   :  { %1149 = vperm.xlu1 %2698, %v1111_v53   ;;  %1683 = vmatprep.subr.bf16.mxu1 %v3891_v30 }
 0x47a   :  { %1585 = vmatpush1.bf16.msra.mxu0 %v2752_v47 }
 0x47b   :  { %1586 = vmatprep.subr.bf16.mxu0 %v2758_v51  ;;  %v2951_v51 = vld [vmem:[#allocation6 + $0x28] sm:$0xff]  }
 0x47c   :  { %1684 = vmatpush1.bf16.msra.mxu1 %v3893_v25  ;;  %v210_v57 = vunpack.c.h.bf16 %v2951_v51 }
 0x47d   :  { %1154 = vperm.xlu1 %2698, %v1112_v6   ;;  %1685 = vmatprep.subr.bf16.mxu1 %v3905_v34  ;;  %v2949_v6 = vld [vmem:[#allocation6 + $0x18] sm:$0xff]  }
 0x47e   :  { %1587 = vmatpush1.bf16.msra.mxu0 %v2756_v55  ;;  %v209_v55 = vunpack.c.l.bf16 %v2951_v51 }
 0x47f   :  { %2528 = vmatmul.mubr.msk.bf16.gmra.mrb[8].mxu1 %vm457_vm1, %v2745_v21  ;;  %1588 = vmatprep.subr.bf16.mxu0 %v2764_v37 }
 0x480   :  { %1414 = vmatprep.mubr.bf16.mxu1 %v3273_v22  ;;  %1686 = vmatpush1.bf16.msra.mxu1 %v3908_v33 }
 0x481   :  { %1159 = vperm.xlu1 %2698, %v1113_v44   ;;  %1687 = vmatprep.subr.bf16.mxu1 %v3911_v52  ;;  %v206_v44 = vunpack.c.h.bf16 %v2949_v6 }
 0x482   :  { %1589 = vmatpush1.bf16.msra.mxu0 %v2762_v59 }
 0x483   :  { %1590 = vmatprep.subr.bf16.mxu0 %v2768_v61 }
 0x484   :  { %1688 = vmatpush1.bf16.msra.mxu1 %v3922_v58 }
 0x485   :  { %1169 = vperm.xlu1 %2698, %v1115_v10   ;;  %1840 = vmatprep.subr.bf16.mxu1 %v3870_v16  ;;  %v199_v10 = vunpack.c.l.bf16 %v2947_v63 }
 0x486   :  { %1591 = vmatpush1.bf16.msra.mxu0 %v2766_v45 }
 0x487   :  { %2529 = vmatmul.mubr.msk.bf16.gmra.mrb[12].mxu1 %vm457_vm1, %v2755_v50  ;;  %1762 = vmatprep.subr.bf16.mxu0 %v3870_v16 }
 0x488   :  { %1424 = vmatprep.mubr.bf16.mxu1 %v3273_v22 }
 0x489   :  { %1174 = vperm.xlu1 %2698, %v1116_v42  }
 0x48d   :  { %1179 = vperm.xlu1 %2698, %v1117_v17   ;;  %v205_v17 = vunpack.c.l.bf16 %v2949_v6 }
 0x48f   :  { %2530 = vmatmul.mubr.msk.bf16.gmra.mrb[16].mxu1 %vm457_vm1, %v2765_v60 }
 0x490   :  { %1713 = vmatprep.mubr.bf16.mxu1 %v3273_v22 }
 0x491   :  { %1184 = vperm.xlu1 %2698, %v1118_v7  }
 0x495   :  { %1189 = vperm.xlu1 %2698, %v1119_v29  }
 0x497   :  { %2555 = vmatmul.mubr.msk.bf16.vlgmr.msra.gmra.mrb[20].mxu1 %vm457_vm1, %v3532_v13 }
 0x498   :  { %1841 = vmatpush1.bf16.msra.mxu1 %v3873_v18  ;;  %1872 = vmatprep.mubr.bf16.mxu1 %v3273_v22 }
 0x499   :  { %1199 = vperm.xlu1 %2698, %v1121_v2   ;;  %1842 = vmatprep.subr.bf16.mxu1 %v3891_v30 }
 0x49c   :  { %1843 = vmatpush1.bf16.msra.mxu1 %v3893_v25 }
 0x49d   :  { %1844 = vmatprep.subr.bf16.mxu1 %v3905_v34 }
 0x4a0   :  { %1845 = vmatpush1.bf16.msra.mxu1 %v3908_v33 }
 0x4a1   :  { %1846 = vmatprep.subr.bf16.mxu1 %v3911_v52 }
 0x4a4   :  { %1847 = vmatpush1.bf16.msra.mxu1 %v3922_v58 }
 0x4a5   :  { %1996 = vmatprep.subr.bf16.mxu1 %v3870_v16 }
 0x4e4   :  { %v1125_v46 = vpop.permute.xlu1 %1124  ;;  %v1165_v2 = vpop.permute.xlu0 %1164 }
 0x4e5   :  { %v1202_v27 = vmul.f32 %v1125_v46, %v199_v10  ;;  %v1210_v15 = vmul.f32 %v1165_v2, %v207_v31 }
 0x4e8   :  { %v1130_v13 = vpop.permute.xlu1 %1129  ;;  %v1195_v24 = vpop.permute.xlu0 %1194 }
 0x4e9   :  { %v1203_v54 = vmul.f32 %v1130_v13, %v200_v28 }
 0x4eb   :  { %v1218_v38 = vadd.f32 %v1203_v54, %v1202_v27 }
 0x4ec   :  { %v1135_v43 = vpop.permute.xlu1 %1134 }
 0x4ed   :  { %v1204_v29 = vmul.f32 %v1135_v43, %v201_v1  ;;  %v1219_v48 = vrot.slane %v1218_v38, 4 }
 0x4ef   :  { %v1220_v60 = vadd.f32 %v1219_v48, %v1218_v38 }
 0x4f0   :  { %v1140_v41 = vpop.permute.xlu1 %1139 }
 0x4f1   :  { %v1205_v42 = vmul.f32 %v1140_v41, %v202_v5  ;;  %v1221_v4 = vrot.slane %v1220_v60, 2 }
 0x4f3   :  { %v1225_v40 = vadd.f32 %v1205_v42, %v1204_v29 }
 0x4f4   :  { %v1145_v0 = vpop.permute.xlu1 %1144 }
 0x4f5   :  { %v1206_v9 = vmul.f32 %v1145_v0, %v203_v32  ;;  %v1226_v21 = vrot.slane %v1225_v40, 4  ;;  %v2953_v32 = vld [vmem:[#allocation6 + $0x38] sm:$0xff]  }
 0x4f6   :  { %v213_v42 = vunpack.c.l.bf16 %v2953_v32 }
 0x4f7   :  { %v1227_v59 = vadd.f32 %v1226_v21, %v1225_v40 }
 0x4f8   :  { %v1150_v3 = vpop.permute.xlu1 %1149 }
 0x4f9   :  { %v1207_v20 = vmul.f32 %v1150_v3, %v204_v35  ;;  %v1228_v0 = vrot.slane %v1227_v59, 2  ;;  %v2952_v35 = vld [vmem:[#allocation6 + $0x30] sm:$0xff]  }
 0x4fa   :  { %v212_v1 = vunpack.c.h.bf16 %v2952_v35 }
 0x4fb   :  { %v1232_v14 = vadd.f32 %v1207_v20, %v1206_v9 }
 0x4fc   :  { %v1155_v53 = vpop.permute.xlu1 %1154 }
 0x4fd   :  { %v1208_v11 = vmul.f32 %v1155_v53, %v205_v17  ;;  %v1233_v47 = vrot.slane %v1232_v14, 4  ;;  %v211_v53 = vunpack.c.l.bf16 %v2952_v35  ;;  %v1222_v17 = vadd.f32 %v1221_v4, %v1220_v60 }
 0x4ff   :  { %v1234_v61 = vadd.f32 %v1233_v47, %v1232_v14 }
 0x500   :  { %v1160_v7 = vpop.permute.xlu1 %1159 }
 0x501   :  { %v1209_v8 = vmul.f32 %v1160_v7, %v206_v44  ;;  %v1235_v5 = vrot.slane %v1234_v61, 2  ;;  %v1229_v44 = vadd.f32 %v1228_v0, %v1227_v59  ;;  %v214_v7 = vunpack.c.h.bf16 %v2953_v32 }
 0x503   :  { %v1239_v19 = vadd.f32 %v1209_v8, %v1208_v11  ;;  %v1236_v54 = vadd.f32 %v1235_v5, %v1234_v61  ;;  %v1230_v27 = vrot.slane %v1229_v44, 1  ;;  %v1216_v11 = vmul.f32 %v1195_v24, %v213_v42 }
 0x504   :  { %v1170_v12 = vpop.permute.xlu1 %1169 }
 0x505   :  { %v1211_v56 = vmul.f32 %v1170_v12, %v208_v39  ;;  %v1240_v50 = vrot.slane %v1239_v19, 4  ;;  %v1237_v38 = vrot.slane %v1236_v54, 1  ;;  %v1223_v12 = vrot.slane %v1222_v17, 1 }
 0x507   :  { %v1246_v26 = vadd.f32 %v1211_v56, %v1210_v15  ;;  %v1241_v46 = vadd.f32 %v1240_v50, %v1239_v19  ;;  %v1238_v50 = vadd.f32 %v1237_v38, %v1236_v54  ;;  %v1224_v51 = vadd.f32 %v1223_v12, %v1222_v17 }
 0x508   :  { %v1175_v49 = vpop.permute.xlu1 %1174 }
 0x509   :  { %v1247_v37 = vrot.slane %v1246_v26, 4  ;;  %v1212_v13 = vmul.f32 %v1175_v49, %v209_v55  ;;  %v1242_v28 = vrot.slane %v1241_v46, 2 }
 0x50b   :  { %v1248_v41 = vadd.f32 %v1247_v37, %v1246_v26  ;;  %v1243_v31 = vadd.f32 %v1242_v28, %v1241_v46  ;;  %v1231_v26 = vadd.f32 %v1230_v27, %v1229_v44 }
 0x50c   :  { %v1180_v45 = vpop.permute.xlu1 %1179 }
 0x50d   :  { %v1213_v43 = vmul.f32 %v1180_v45, %v210_v57  ;;  %v1249_v6 = vrot.slane %v1248_v41, 2  ;;  %v1244_v15 = vrot.slane %v1243_v31, 1  ;;  %v1436_v60 = vpack.c.bf16 %v1231_v26, %v1231_v26 }
 0x50f   :  { %v1253_v3 = vadd.f32 %v1213_v43, %v1212_v13  ;;  %v1250_v2 = vadd.f32 %v1249_v6, %v1248_v41  ;;  %v1245_v55 = vadd.f32 %v1244_v15, %v1243_v31  ;;  %v1437_v13 = vpack.c.bf16 %v1238_v50, %v1238_v50 }
 0x510   :  { %v1185_v63 = vpop.permute.xlu1 %1184  ;;  %v1435_v43 = vpack.c.bf16 %v1224_v51, %v1224_v51  ;;  %v1480_v5 = vunpack.c.l.b16 %v1436_v60  ;;  %v1459_v60 = vld [vmem:[%s4179_s11] sm:$0x3] }
 0x511   :  { %v1254_v62 = vrot.slane %v1253_v3, 4  ;;  %v1214_v8 = vmul.f32 %v1185_v63, %v211_v53  ;;  %v1251_v21 = vrot.slane %v1250_v2, 1  ;;  %v1438_v41 = vpack.c.bf16 %v1245_v55, %v1245_v55 }
 0x512   :  { %v1481_v35 = vunpack.c.l.b16 %v1437_v13  ;;  %v1479_v53 = vunpack.c.l.b16 %v1435_v43 }
 0x513   :  { %v1255_v10 = vadd.f32 %v1254_v62, %v1253_v3  ;;  %v1252_v59 = vadd.f32 %v1251_v21, %v1250_v2 }
 0x514   :  { %v1190_v20 = vpop.permute.xlu1 %1189  ;;  %v1487_v32 = vsel %vm809_vm3, %v1480_v5, %v1479_v53 }
 0x515   :  { %v1256_v29 = vrot.slane %v1255_v10, 2  ;;  %v1215_v39 = vmul.f32 %v1190_v20, %v212_v1  ;;  %v1439_v4 = vpack.c.bf16 %v1252_v59, %v1252_v59  ;;  %v1482_v1 = vunpack.c.l.b16 %v1438_v41 }
 0x516   :  { %v1488_v54 = vsel %vm811_vm4, %v1481_v35, %v1487_v32 }
 0x517   :  { %v1257_v9 = vadd.f32 %v1256_v29, %v1255_v10  ;;  %v1260_v40 = vadd.f32 %v1215_v39, %v1214_v8  ;;  %v1483_v10 = vunpack.c.l.b16 %v1439_v4 }
 0x518   :  { %v1200_v14 = vpop.permute.xlu1 %1199 }
 0x519   :  { %v1261_v19 = vrot.slane %v1260_v40, 4  ;;  %v1217_v56 = vmul.f32 %v1200_v14, %v214_v7  ;;  %v1258_v48 = vrot.slane %v1257_v9, 1  ;;  %v1489_v7 = vsel %vm813_vm5, %v1482_v1, %v1488_v54 }
 0x51a   :  { %v1490_v31 = vsel %vm815_vm6, %v1483_v10, %v1489_v7 }
 0x51b   :  { %v1262_v47 = vadd.f32 %v1261_v19, %v1260_v40  ;;  %v1267_v49 = vadd.f32 %v1217_v56, %v1216_v11  ;;  %v1259_v61 = vadd.f32 %v1258_v48, %v1257_v9 }
 0x51d   :  { %v1263_v57 = vrot.slane %v1262_v47, 2  ;;  %v1268_v37 = vrot.slane %v1267_v49, 4  ;;  %v1440_v63 = vpack.c.bf16 %v1259_v61, %v1259_v61  ;;  %v1464_v61 = vrot.slane %v1459_v60, %v3547_v36 }
 0x51f   :  { %v1264_v45 = vadd.f32 %v1263_v57, %v1262_v47  ;;  %v1269_v46 = vadd.f32 %v1268_v37, %v1267_v49  ;;  %v1484_v42 = vunpack.c.l.b16 %v1440_v63 }
 0x521   :  { %v1265_v0 = vrot.slane %v1264_v45, 1  ;;  %v1270_v3 = vrot.slane %v1269_v46, 2  ;;  %v1491_v29 = vsel %vm817_vm7, %v1484_v42, %v1490_v31 }
 0x523   :  { %v1266_v28 = vadd.f32 %v1265_v0, %v1264_v45  ;;  %v1271_v62 = vadd.f32 %v1270_v3, %v1269_v46  ;;  %v1468_v45 = vrot.slane %v1459_v60, %v3701_v23 }
 0x525   :  { %v1441_v6 = vpack.c.bf16 %v1266_v28, %v1266_v28  ;;  %v1272_v44 = vrot.slane %v1271_v62, 1 }
 0x527   :  { %v1273_v17 = vadd.f32 %v1272_v44, %v1271_v62  ;;  %v1485_v20 = vunpack.c.l.b16 %v1441_v6 }
 0x529   :  { %v1442_v24 = vpack.c.bf16 %v1273_v17, %v1273_v17  ;;  %v1492_v39 = vsel %vm819_vm8, %v1485_v20, %v1491_v29 }
 0x52b   :  { %v1486_v8 = vunpack.c.l.b16 %v1442_v24 }
 0x52d   :  { %v1493_v2 = vsel %vm821_vm9, %v1486_v8, %v1492_v39 }
 0x52e   :  { %v1494_v27 = vpack.c.b16 %v1493_v2, %v1493_v2 }
 0x530   :  { %1609 = vmatmul.mubr.bf16.vlgmr.msra.gmra.mrb[16].mxu0 %v1494_v27 }
 0x531   :  { %1763 = vmatpush1.bf16.msra.mxu0 %v3873_v18  ;;  %1794 = vmatprep.mubr.bf16.mxu0 %v3273_v22 }
 0x532   :  { %1764 = vmatprep.subr.bf16.mxu0 %v3891_v30 }
 0x535   :  { %1765 = vmatpush1.bf16.msra.mxu0 %v3893_v25 }
 0x536   :  { %1766 = vmatprep.subr.bf16.mxu0 %v3905_v34 }
 0x539   :  { %1767 = vmatpush1.bf16.msra.mxu0 %v3908_v33 }
 0x53a   :  { %1768 = vmatprep.subr.bf16.mxu0 %v3911_v52 }
 0x53d   :  { %1769 = vmatpush1.bf16.msra.mxu0 %v3922_v58 }
 0x53e   :  { %1918 = vmatprep.subr.bf16.mxu0 %v3870_v16 }
 0x54a   :  { %v1396_v9 = vpop.f32.mrb[4].mxu1 }
 0x54b   :  { %v1398_v40 = vpop.f32.mrb[5].mxu1 }
 0x54c   :  { %v1400_v11 = vpop.f32.mrb[6].mxu1 }
 0x54d   :  { %v1402_v38 = vpop.f32.mrb[7].mxu1 }
 0x552   :  { %v1406_v14 = vpop.f32.mrb[8].mxu1 }
 0x553   :  { %v1408_v12 = vpop.f32.mrb[9].mxu1 }
 0x554   :  { %v1410_v15 = vpop.f32.mrb[10].mxu1 }
 0x555   :  { %v1412_v19 = vpop.f32.mrb[11].mxu1 }
 0x55a   :  { %v1416_v56 = vpop.f32.mrb[12].mxu1 }
 0x55b   :  { %v1418_v21 = vpop.f32.mrb[13].mxu1 }
 0x55c   :  { %v1420_v26 = vpop.f32.mrb[14].mxu1 }
 0x55d   :  { %v1422_v48 = vpop.f32.mrb[15].mxu1 }
 0x562   :  { %v1426_v47 = vpop.f32.mrb[16].mxu1 }
 0x563   :  { %v1428_v49 = vpop.f32.mrb[17].mxu1 }
 0x564   :  { %v1430_v50 = vpop.f32.mrb[18].mxu1 }
 0x565   :  { %v1432_v51 = vpop.f32.mrb[19].mxu1 }
 0x56a   :  { %v1715_v55 = vpop.f32.mrb[20].mxu1 }
 0x56b   :  { %v1717_v57 = vpop.f32.mrb[21].mxu1 }
 0x56c   :  { %v1719_v37 = vpop.f32.mrb[22].mxu1 }
 0x56d   :  { %v1720_v59 = vpop.f32.mrb[23].mxu1 }
 0x603   :  { %v1610_v46 = vpop.f32.mrb[16].mxu0 }
 0x604   :  { %v1611_v13 = vadd.f32 %v1610_v46, %v1464_v61  ;;  %v1612_v43 = vpop.f32.mrb[17].mxu0 }
 0x605   :  { %v1613_v41 = vadd.f32 %v1612_v43, %v1468_v45  ;;  %v1614_v0 = vpop.f32.mrb[18].mxu0 }
 0x606   :  { %v1617_v3 = vadd.f32 %v1611_v13, %v1396_v9  ;;  %v1615_v4 = vpop.f32.mrb[19].mxu0  ;;  %v1619_v5 = vadd.f32 %v1611_v13, %v1400_v11  ;;  %v3972_v63 = vadd.f32 %v1611_v13, %v1406_v14  ;;  %v3974_v28 = vadd.f32 %v1611_v13, %v1410_v15  ;;  %v1739_v9 = vpop.permute.xlu0 %1738 }
 0x607   :  { %v1618_v62 = vadd.f32 %v1613_v41, %v1398_v40  ;;  %v1620_v35 = vadd.f32 %v1613_v41, %v1402_v38  ;;  %v3976_v53 = vadd.f32 %v1613_v41, %v1408_v12  ;;  %v3978_v1 = vadd.f32 %v1613_v41, %v1412_v19 }
 0x608   :  { %v1722_v36 = vadd.f32 %v1715_v55, %v1617_v3  ;;  %v3980_v23 = vadd.f32 %v1611_v13, %v1416_v56  ;;  %v3982_v6 = vadd.f32 %v1613_v41, %v1418_v21  ;;  %v3984_v44 = vadd.f32 %v1611_v13, %v1420_v26 }
 0x609   :  { %v1723_v10 = vadd.f32 %v1717_v57, %v1618_v62  ;;  %v3986_v32 = vadd.f32 %v1613_v41, %v1422_v48  ;;  %v3988_v42 = vadd.f32 %v1611_v13, %v1426_v47  ;;  %v3990_v17 = vadd.f32 %v1613_v41, %v1428_v49 }
 0x60a   :  { %v2556_v54 = vmul.f32 -1.442695, %v1722_v36  ;;  %v3992_v20 = vadd.f32 %v1611_v13, %v1430_v50  ;;  %v3994_v7 = vadd.f32 %v1613_v41, %v1432_v51 }
 0x60b   :  { %v2557_v2 = vmul.f32 -1.442695, %v1723_v10 }
 0x60c   :  { %2850 = vpow2.f32 %v2556_v54 }
 0x60d   :  { %2852 = vtanh.f32 %v1723_v10 }
 0x616   :  { %v2851_v24 = vpop.eup %2850 }
 0x617   :  { %v1727_v31 = vadd.f32 1.0, %v2851_v24  ;;  %v2853_v29 = vpop.eup %2852 }
 0x619   :  { %2854 = vrcp.f32 %v1727_v31 }
 0x61a   :  { %2856 = vpow2.f32 %v2557_v2 }
 0x623   :  { %v2855_v8 = vpop.eup %2854 }
 0x624   :  { %v1742_v39 = vmul.f32 %v2855_v8, %v2853_v29  ;;  %v2857_v27 = vpop.eup %2856  ;;  %v1741_v11 = vmul.f32 %v2855_v8, %v1739_v9 }
 0x625   :  { %v1734_v40 = vadd.f32 1.0, %v2857_v27 }
 0x626   :  { %1744 = vrot.lane.b32.xlu1 %v1742_v39, %s4190_s23 }
 0x627   :  { %2858 = vrcp.f32 %v1734_v40 }
 0x631   :  { %v2859_v12 = vpop.eup %2858 }
 0x698   :  { %v1745_v38 = vpop.permute.xlu1 %1744 }
 0x699   :  { %v1747_v14 = vadd.f32 %v1745_v38, %v1741_v11 }
 0x69b   :  { %2860 = vtanh.f32 %v1747_v14 }
 0x6a5   :  { %v2861_v15 = vpop.eup %2860 }
 0x6a6   :  { %v3997_v19 = vmul.f32 %v2861_v15, %v2859_v12 }
 0x6a8   :  { %v1755_v56 = vpack.c.bf16 %v3997_v19, %v3997_v19 }
 0x6aa   :  { %1757 = vrot.lane.b32.xlu0 %v1755_v56, %s4190_s23 }
 0x71c   :  { %v1758_v21 = vpop.permute.xlu0 %1757 }
 0x71d   :  { %2558 = vmatmul.mubr.msk.bf16.vlgmr.msra.gmra.mrb[20].mxu0 %vm457_vm1, %v1758_v21 }
 0x71e   :  { %1919 = vmatpush1.bf16.msra.mxu0 %v3873_v18  ;;  %1950 = vmatprep.mubr.bf16.mxu0 %v3273_v22 }
 0x71f   :  { %1920 = vmatprep.subr.bf16.mxu0 %v3891_v30 }
 0x722   :  { %1921 = vmatpush1.bf16.msra.mxu0 %v3893_v25 }
 0x723   :  { %1922 = vmatprep.subr.bf16.mxu0 %v3905_v34 }
 0x726   :  { %1923 = vmatpush1.bf16.msra.mxu0 %v3908_v33 }
 0x727   :  { %1924 = vmatprep.subr.bf16.mxu0 %v3911_v52 }
 0x72a   :  { %1925 = vmatpush1.bf16.msra.mxu0 %v3922_v58 }
 0x72b   :  { %2074 = vmatprep.subr.bf16.mxu0 %v3870_v16 }
 0x7f0   :  { %v1796_v26 = vpop.f32.mrb[20].mxu0 }
 0x7f1   :  { %v1803_v48 = vadd.f32 %v1796_v26, %v1619_v5  ;;  %v1798_v47 = vpop.f32.mrb[21].mxu0 }
 0x7f2   :  { %v1804_v49 = vadd.f32 %v1798_v47, %v1620_v35  ;;  %v1800_v50 = vpop.f32.mrb[22].mxu0 }
 0x7f3   :  { %v2559_v51 = vmul.f32 -1.442695, %v1803_v48  ;;  %v1801_v55 = vpop.f32.mrb[23].mxu0 }
 0x7f4   :  { %v2560_v45 = vmul.f32 -1.442695, %v1804_v49 }
 0x7f5   :  { %2862 = vpow2.f32 %v2559_v51 }
 0x7f6   :  { %2864 = vtanh.f32 %v1804_v49 }
 0x7ff   :  { %v2863_v57 = vpop.eup %2862 }
 0x800   :  { %v1808_v37 = vadd.f32 1.0, %v2863_v57  ;;  %v2865_v59 = vpop.eup %2864 }
 0x802   :  { %2866 = vrcp.f32 %v1808_v37 }
 0x803   :  { %2868 = vpow2.f32 %v2560_v45 }
 0x80c   :  { %v2867_v60 = vpop.eup %2866 }
 0x80d   :  { %v1819_v61 = vmul.f32 %v2867_v60, %v2865_v59  ;;  %v2869_v46 = vpop.eup %2868  ;;  %v1818_v43 = vmul.f32 %v2867_v60, %v1747_v14 }
 0x80e   :  { %v1815_v13 = vadd.f32 1.0, %v2869_v46 }
 0x80f   :  { %1821 = vrot.lane.b32.xlu1 %v1819_v61, %s4190_s23 }
 0x810   :  { %2870 = vrcp.f32 %v1815_v13 }
 0x81a   :  { %v2871_v3 = vpop.eup %2870 }
 0x881   :  { %v1822_v41 = vpop.permute.xlu1 %1821 }
 0x882   :  { %v1824_v0 = vadd.f32 %v1822_v41, %v1818_v43 }
 0x884   :  { %2872 = vtanh.f32 %v1824_v0 }
 0x88e   :  { %v2873_v4 = vpop.eup %2872 }
 0x88f   :  { %v4013_v5 = vmul.f32 %v2873_v4, %v2871_v3 }
 0x891   :  { %v1833_v62 = vpack.c.bf16 %v4013_v5, %v4013_v5 }
 0x893   :  { %1835 = vrot.lane.b32.xlu0 %v1833_v62, %s4190_s23 }
 0x905   :  { %v1836_v35 = vpop.permute.xlu0 %1835 }
 0x906   :  { %2561 = vmatmul.mubr.msk.bf16.vlgmr.msra.gmra.mrb[24].mxu1 %vm457_vm1, %v1836_v35 }
 0x907   :  { %1997 = vmatpush1.bf16.msra.mxu1 %v3873_v18  ;;  %2028 = vmatprep.mubr.bf16.mxu1 %v3273_v22 }
 0x908   :  { %1998 = vmatprep.subr.bf16.mxu1 %v3891_v30 }
 0x90b   :  { %1999 = vmatpush1.bf16.msra.mxu1 %v3893_v25 }
 0x90c   :  { %2000 = vmatprep.subr.bf16.mxu1 %v3905_v34 }
 0x90f   :  { %2001 = vmatpush1.bf16.msra.mxu1 %v3908_v33 }
 0x910   :  { %2002 = vmatprep.subr.bf16.mxu1 %v3911_v52 }
 0x913   :  { %2003 = vmatpush1.bf16.msra.mxu1 %v3922_v58 }
 0x914   :  { %2152 = vmatprep.subr.bf16.mxu1 %v3870_v16 }
 0x9d9   :  { %v1874_v36 = vpop.f32.mrb[24].mxu1 }
 0x9da   :  { %v1881_v10 = vadd.f32 %v1874_v36, %v3972_v63  ;;  %v1876_v54 = vpop.f32.mrb[25].mxu1 }
 0x9db   :  { %v1882_v24 = vadd.f32 %v1876_v54, %v3976_v53  ;;  %v1878_v31 = vpop.f32.mrb[26].mxu1 }
 0x9dc   :  { %v2562_v29 = vmul.f32 -1.442695, %v1881_v10  ;;  %v1879_v8 = vpop.f32.mrb[27].mxu1 }
 0x9dd   :  { %v2563_v11 = vmul.f32 -1.442695, %v1882_v24 }
 0x9de   :  { %2874 = vpow2.f32 %v2562_v29 }
 0x9df   :  { %2876 = vtanh.f32 %v1882_v24 }
 0x9e8   :  { %v2875_v39 = vpop.eup %2874 }
 0x9e9   :  { %v1886_v2 = vadd.f32 1.0, %v2875_v39  ;;  %v2877_v27 = vpop.eup %2876 }
 0x9eb   :  { %2878 = vrcp.f32 %v1886_v2 }
 0x9ec   :  { %2880 = vpow2.f32 %v2563_v11 }
 0x9f5   :  { %v2879_v9 = vpop.eup %2878 }
 0x9f6   :  { %v1897_v40 = vmul.f32 %v2879_v9, %v2877_v27  ;;  %v2881_v38 = vpop.eup %2880  ;;  %v1896_v14 = vmul.f32 %v2879_v9, %v1824_v0 }
 0x9f7   :  { %v1893_v63 = vadd.f32 1.0, %v2881_v38 }
 0x9f8   :  { %1899 = vrot.lane.b32.xlu1 %v1897_v40, %s4190_s23 }
 0x9f9   :  { %2882 = vrcp.f32 %v1893_v63 }
 0xa03   :  { %v2883_v15 = vpop.eup %2882 }
 0xa6a   :  { %v1900_v12 = vpop.permute.xlu1 %1899 }
 0xa6b   :  { %v1902_v53 = vadd.f32 %v1900_v12, %v1896_v14 }
 0xa6d   :  { %2884 = vtanh.f32 %v1902_v53 }
 0xa77   :  { %v2885_v56 = vpop.eup %2884 }
 0xa78   :  { %v4031_v21 = vmul.f32 %v2885_v56, %v2883_v15 }
 0xa7a   :  { %v1911_v26 = vpack.c.bf16 %v4031_v21, %v4031_v21 }
 0xa7c   :  { %1913 = vrot.lane.b32.xlu0 %v1911_v26, %s4190_s23 }
 0xaee   :  { %v1914_v48 = vpop.permute.xlu0 %1913 }
 0xaef   :  { %2564 = vmatmul.mubr.msk.bf16.vlgmr.msra.gmra.mrb[24].mxu0 %vm457_vm1, %v1914_v48 }
 0xaf0   :  { %2075 = vmatpush1.bf16.msra.mxu0 %v3873_v18  ;;  %2106 = vmatprep.mubr.bf16.mxu0 %v3273_v22 }
 0xaf1   :  { %2076 = vmatprep.subr.bf16.mxu0 %v3891_v30 }
 0xaf4   :  { %2077 = vmatpush1.bf16.msra.mxu0 %v3893_v25 }
 0xaf5   :  { %2078 = vmatprep.subr.bf16.mxu0 %v3905_v34 }
 0xaf8   :  { %2079 = vmatpush1.bf16.msra.mxu0 %v3908_v33 }
 0xaf9   :  { %2080 = vmatprep.subr.bf16.mxu0 %v3911_v52 }
 0xafc   :  { %2081 = vmatpush1.bf16.msra.mxu0 %v3922_v58 }
 0xafd   :  { %2230 = vmatprep.subr.bf16.mxu0 %v3870_v16 }
 0xbc2   :  { %v1952_v47 = vpop.f32.mrb[24].mxu0 }
 0xbc3   :  { %v1959_v49 = vadd.f32 %v1952_v47, %v3974_v28  ;;  %v1954_v50 = vpop.f32.mrb[25].mxu0 }
 0xbc4   :  { %v1960_v51 = vadd.f32 %v1954_v50, %v3978_v1  ;;  %v1956_v55 = vpop.f32.mrb[26].mxu0 }
 0xbc5   :  { %v2565_v57 = vmul.f32 -1.442695, %v1959_v49  ;;  %v1957_v37 = vpop.f32.mrb[27].mxu0 }
 0xbc6   :  { %v2566_v16 = vmul.f32 -1.442695, %v1960_v51 }
 0xbc7   :  { %2886 = vpow2.f32 %v2565_v57 }
 0xbc8   :  { %2888 = vtanh.f32 %v1960_v51 }
 0xbd1   :  { %v2887_v59 = vpop.eup %2886 }
 0xbd2   :  { %v1964_v60 = vadd.f32 1.0, %v2887_v59  ;;  %v2889_v61 = vpop.eup %2888 }
 0xbd4   :  { %2890 = vrcp.f32 %v1964_v60 }
 0xbd5   :  { %2892 = vpow2.f32 %v2566_v16 }
 0xbde   :  { %v2891_v45 = vpop.eup %2890 }
 0xbdf   :  { %v1975_v46 = vmul.f32 %v2891_v45, %v2889_v61  ;;  %v2893_v13 = vpop.eup %2892  ;;  %v1974_v43 = vmul.f32 %v2891_v45, %v1902_v53 }
 0xbe0   :  { %v1971_v28 = vadd.f32 1.0, %v2893_v13 }
 0xbe1   :  { %1977 = vrot.lane.b32.xlu1 %v1975_v46, %s4190_s23 }
 0xbe2   :  { %2894 = vrcp.f32 %v1971_v28 }
 0xbec   :  { %v2895_v0 = vpop.eup %2894 }
 0xc53   :  { %v1978_v41 = vpop.permute.xlu1 %1977 }
 0xc54   :  { %v1980_v1 = vadd.f32 %v1978_v41, %v1974_v43 }
 0xc56   :  { %2896 = vtanh.f32 %v1980_v1 }
 0xc60   :  { %v2897_v3 = vpop.eup %2896 }
 0xc61   :  { %v4049_v4 = vmul.f32 %v2897_v3, %v2895_v0 }
 0xc63   :  { %v1989_v62 = vpack.c.bf16 %v4049_v4, %v4049_v4 }
 0xc65   :  { %1991 = vrot.lane.b32.xlu0 %v1989_v62, %s4190_s23 }
 0xcd7   :  { %v1992_v35 = vpop.permute.xlu0 %1991 }
 0xcd8   :  { %2567 = vmatmul.mubr.msk.bf16.vlgmr.msra.gmra.mrb[28].mxu1 %vm457_vm1, %v1992_v35 }
 0xcd9   :  { %2153 = vmatpush1.bf16.msra.mxu1 %v3873_v18  ;;  %2184 = vmatprep.mubr.bf16.mxu1 %v3273_v22 }
 0xcda   :  { %2154 = vmatprep.subr.bf16.mxu1 %v3891_v30 }
 0xcdd   :  { %2155 = vmatpush1.bf16.msra.mxu1 %v3893_v25 }
 0xcde   :  { %2156 = vmatprep.subr.bf16.mxu1 %v3905_v34 }
 0xce1   :  { %2157 = vmatpush1.bf16.msra.mxu1 %v3908_v33 }
 0xce2   :  { %2158 = vmatprep.subr.bf16.mxu1 %v3911_v52 }
 0xce5   :  { %2159 = vmatpush1.bf16.msra.mxu1 %v3922_v58 }
 0xdab   :  { %v2030_v36 = vpop.f32.mrb[28].mxu1 }
 0xdac   :  { %v2037_v10 = vadd.f32 %v2030_v36, %v3980_v23  ;;  %v2032_v54 = vpop.f32.mrb[29].mxu1 }
 0xdad   :  { %v2038_v24 = vadd.f32 %v2032_v54, %v3982_v6  ;;  %v2034_v31 = vpop.f32.mrb[30].mxu1 }
 0xdae   :  { %v2568_v29 = vmul.f32 -1.442695, %v2037_v10  ;;  %v2035_v8 = vpop.f32.mrb[31].mxu1 }
 0xdaf   :  { %v2569_v11 = vmul.f32 -1.442695, %v2038_v24 }
 0xdb0   :  { %2898 = vpow2.f32 %v2568_v29 }
 0xdb1   :  { %2900 = vtanh.f32 %v2038_v24 }
 0xdba   :  { %v2899_v39 = vpop.eup %2898 }
 0xdbb   :  { %v2042_v2 = vadd.f32 1.0, %v2899_v39  ;;  %v2901_v27 = vpop.eup %2900 }
 0xdbd   :  { %2902 = vrcp.f32 %v2042_v2 }
 0xdbe   :  { %2904 = vpow2.f32 %v2569_v11 }
 0xdc7   :  { %v2903_v9 = vpop.eup %2902 }
 0xdc8   :  { %v2053_v40 = vmul.f32 %v2903_v9, %v2901_v27  ;;  %v2905_v38 = vpop.eup %2904  ;;  %v2052_v63 = vmul.f32 %v2903_v9, %v1980_v1 }
 0xdc9   :  { %v2049_v23 = vadd.f32 1.0, %v2905_v38 }
 0xdca   :  { %2055 = vrot.lane.b32.xlu1 %v2053_v40, %s4190_s23 }
 0xdcb   :  { %2906 = vrcp.f32 %v2049_v23 }
 0xdd5   :  { %v2907_v12 = vpop.eup %2906 }
 0xe3c   :  { %v2056_v14 = vpop.permute.xlu1 %2055 }
 0xe3d   :  { %v2058_v6 = vadd.f32 %v2056_v14, %v2052_v63 }
 0xe3f   :  { %2908 = vtanh.f32 %v2058_v6 }
 0xe49   :  { %v2909_v53 = vpop.eup %2908 }
 0xe4a   :  { %v4066_v15 = vmul.f32 %v2909_v53, %v2907_v12 }
 0xe4c   :  { %v2067_v56 = vpack.c.bf16 %v4066_v15, %v4066_v15 }
 0xe4e   :  { %2069 = vrot.lane.b32.xlu0 %v2067_v56, %s4190_s23 }
 0xec0   :  { %v2070_v26 = vpop.permute.xlu0 %2069 }
 0xec1   :  { %2570 = vmatmul.mubr.msk.bf16.vlgmr.msra.gmra.mrb[28].mxu0 %vm457_vm1, %v2070_v26  ;;  %v2772_v26 = vld [vmem:[#allocation18] sm:$0xff]  }
 0xec2   :  { %2231 = vmatpush1.bf16.msra.mxu0 %v3873_v18  ;;  %2262 = vmatprep.mubr.bf16.mxu0 %v3273_v22 }
 0xec3   :  { %2232 = vmatprep.subr.bf16.mxu0 %v3891_v30  ;;  %2661 = vmatprep.subr.bf16.mxu1 %v2772_v26 }
 0xec6   :  { %2233 = vmatpush1.bf16.msra.mxu0 %v3893_v25 }
 0xec7   :  { %2234 = vmatprep.subr.bf16.mxu0 %v3905_v34 }
 0xeca   :  { %2235 = vmatpush1.bf16.msra.mxu0 %v3908_v33 }
 0xecb   :  { %2236 = vmatprep.subr.bf16.mxu0 %v3911_v52 }
 0xece   :  { %2237 = vmatpush1.bf16.msra.mxu0 %v3922_v58 }
 0xf94   :  { %v2108_v48 = vpop.f32.mrb[28].mxu0 }
 0xf95   :  { %v2115_v47 = vadd.f32 %v2108_v48, %v3984_v44  ;;  %v2110_v49 = vpop.f32.mrb[29].mxu0  ;;  %v2773_v48 = vld [vmem:[#allocation18 + $0x8] sm:$0xff]  }
 0xf96   :  { %v2116_v18 = vadd.f32 %v2110_v49, %v3986_v32  ;;  %v2112_v50 = vpop.f32.mrb[30].mxu0 }
 0xf97   :  { %v2571_v22 = vmul.f32 -1.442695, %v2115_v47  ;;  %v2113_v51 = vpop.f32.mrb[31].mxu0  ;;  %v2774_v47 = vld [vmem:[#allocation18 + $0x10] sm:$0xff]  }
 0xf98   :  { %v2572_v52 = vmul.f32 -1.442695, %v2116_v18 }
 0xf99   :  { %2910 = vpow2.f32 %v2571_v22 }
 0xf9a   :  { %2912 = vtanh.f32 %v2116_v18 }
 0xfa3   :  { %v2911_v30 = vpop.eup %2910 }
 0xfa4   :  { %v2120_v25 = vadd.f32 1.0, %v2911_v30  ;;  %v2913_v34 = vpop.eup %2912 }
 0xfa6   :  { %2914 = vrcp.f32 %v2120_v25 }
 0xfa7   :  { %2916 = vpow2.f32 %v2572_v52 }
 0xfb0   :  { %v2915_v33 = vpop.eup %2914 }
 0xfb1   :  { %v2131_v55 = vmul.f32 %v2915_v33, %v2913_v34  ;;  %v2917_v58 = vpop.eup %2916  ;;  %v2130_v57 = vmul.f32 %v2915_v33, %v2058_v6 }
 0xfb2   :  { %v2127_v44 = vadd.f32 1.0, %v2917_v58 }
 0xfb3   :  { %2133 = vrot.lane.b32.xlu1 %v2131_v55, %s4190_s23 }
 0xfb4   :  { %2918 = vrcp.f32 %v2127_v44 }
 0xfbe   :  { %v2919_v59 = vpop.eup %2918 }
0x1025   :  { %v2134_v37 = vpop.permute.xlu1 %2133 }
0x1026   :  { %v2136_v32 = vadd.f32 %v2134_v37, %v2130_v57 }
0x1028   :  { %2920 = vtanh.f32 %v2136_v32 }
0x1032   :  { %v2921_v60 = vpop.eup %2920 }
0x1033   :  { %v4083_v61 = vmul.f32 %v2921_v60, %v2919_v59 }
0x1035   :  { %v2145_v45 = vpack.c.bf16 %v4083_v61, %v4083_v61 }
0x1037   :  { %2147 = vrot.lane.b32.xlu0 %v2145_v45, %s4190_s23 }
0x10a9   :  { %v2148_v46 = vpop.permute.xlu0 %2147 }
0x10aa   :  { %2573 = vmatmul.mubr.msk.bf16.vlgmr.msra.gmra.mrb[32].mxu1 %vm457_vm1, %v2148_v46 }
0x10ab   :  { %2662 = vmatpush3.bf16.msra.mxu1 %v2772_v26 }
0x10ac   :  { %2663 = vmatprep.subr.bf16.mxu1 %v2773_v48 }
0x10af   :  { %2664 = vmatpush3.bf16.msra.mxu1 %v2773_v48 }
0x10b0   :  { %2665 = vmatprep.subr.bf16.mxu1 %v2774_v47 }
0x10b3   :  { %2666 = vmatpush3.bf16.msra.mxu1 %v2774_v47 }
0x117d   :  { %v2186_v16 = vpop.f32.mrb[32].mxu1 }
0x117e   :  { %v2193_v13 = vadd.f32 %v2186_v16, %v3988_v42  ;;  %v2188_v28 = vpop.f32.mrb[33].mxu1 }
0x117f   :  { %v2194_v43 = vadd.f32 %v2188_v28, %v3990_v17  ;;  %v2190_v41 = vpop.f32.mrb[34].mxu1 }
0x1180   :  { %v2574_v1 = vmul.f32 -1.442695, %v2193_v13  ;;  %v2191_v0 = vpop.f32.mrb[35].mxu1 }
0x1181   :  { %v2575_v54 = vmul.f32 -1.442695, %v2194_v43 }
0x1182   :  { %2922 = vpow2.f32 %v2574_v1  ;;  %v2579_v1 = vld [vmem:[%s4181_s13] ss:$0 sm:$0xff] }
0x1183   :  { %2924 = vtanh.f32 %v2194_v43 }
0x118c   :  { %v2923_v3 = vpop.eup %2922 }
0x118d   :  { %v2198_v62 = vadd.f32 1.0, %v2923_v3  ;;  %v2925_v35 = vpop.eup %2924 }
0x118f   :  { %2926 = vrcp.f32 %v2198_v62 }
0x1190   :  { %2928 = vpow2.f32 %v2575_v54 }
0x1199   :  { %v2927_v36 = vpop.eup %2926 }
0x119a   :  { %v2209_v10 = vmul.f32 %v2927_v36, %v2925_v35  ;;  %v2929_v24 = vpop.eup %2928  ;;  %v2208_v31 = vmul.f32 %v2927_v36, %v2136_v32 }
0x119b   :  { %v2205_v42 = vadd.f32 1.0, %v2929_v24 }
0x119c   :  { %2211 = vrot.lane.b32.xlu1 %v2209_v10, %s4190_s23 }
0x119d   :  { %2930 = vrcp.f32 %v2205_v42 }
0x11a7   :  { %v2931_v8 = vpop.eup %2930 }
0x120e   :  { %v2212_v29 = vpop.permute.xlu1 %2211 }
0x120f   :  { %v2214_v17 = vadd.f32 %v2212_v29, %v2208_v31 }
0x1211   :  { %2932 = vtanh.f32 %v2214_v17 }
0x121b   :  { %v2933_v39 = vpop.eup %2932 }
0x121c   :  { %v2216_v2 = vmul.f32 %v2933_v39, %v2931_v8 }
0x121e   :  { %v2223_v27 = vpack.c.bf16 %v2216_v2, %v2216_v2 }
0x1220   :  { %2225 = vrot.lane.b32.xlu0 %v2223_v27, %s4190_s23 }
0x1224   :  { %1751 = vrot.lane.b32.xlu0 %v3997_v19, %s4190_s23 }
0x1228   :  { %1906 = vrot.lane.b32.xlu0 %v4031_v21, %s4190_s23 }
0x122c   :  { %2062 = vrot.lane.b32.xlu0 %v4066_v15, %s4190_s23 }
0x1230   :  { %2218 = vrot.lane.b32.xlu0 %v2216_v2, %s4190_s23 }
0x1292   :  { %v2226_v9 = vpop.permute.xlu0 %2225 }
0x1293   :  { %2576 = vmatmul.mubr.msk.bf16.vlgmr.msra.gmra.mrb[32].mxu0 %vm457_vm1, %v2226_v9 }
0x1296   :  { %v1752_v40 = vpop.permute.xlu0 %1751 }
0x1297   :  { %1754 = vst.msk [vmem:[#allocation2] sm:$0xff] %vm457_vm1, %v1752_v40 }
0x129a   :  { %v1907_v11 = vpop.permute.xlu0 %1906 }
0x129b   :  { %1910 = vst.msk [vmem:[#allocation2 + $0x10] sm:$0xff] %vm457_vm1, %v1907_v11 }
0x129e   :  { %v2063_v38 = vpop.permute.xlu0 %2062  ;;  %v2301_v52 = vld [vmem:[#allocation2] sm:$0xff] }
0x129f   :  { %2066 = vst.msk [vmem:[#allocation2 + $0x20] sm:$0xff] %vm457_vm1, %v2063_v38 }
0x12a2   :  { %v2219_v19 = vpop.permute.xlu0 %2218  ;;  %v2303_v32 = vld [vmem:[#allocation2 + $0x10] sm:$0xff] }
0x12a3   :  { %2222 = vst.msk [vmem:[#allocation2 + $0x30] sm:$0xff] %vm457_vm1, %v2219_v19 }
0x12aa   :  { %v2307_v28 = vld [vmem:[#allocation2 + $0x30] sm:$0xff] }
0x1366   :  { %v2264_v21 = vpop.f32.mrb[32].mxu0 }
0x1367   :  { %v2271_v23 = vadd.f32 %v2264_v21, %v3992_v20  ;;  %v2266_v63 = vpop.f32.mrb[33].mxu0 }
0x1368   :  { %v2272_v14 = vadd.f32 %v2266_v63, %v3994_v7  ;;  %v2268_v6 = vpop.f32.mrb[34].mxu0  ;;  %v2775_v7 = vld [vmem:[#allocation18 + $0x18] sm:$0xff]  }
0x1369   :  { %v2577_v12 = vmul.f32 -1.442695, %v2271_v23  ;;  %v2269_v53 = vpop.f32.mrb[35].mxu0  ;;  %2667 = vmatprep.subr.bf16.mxu1 %v2775_v7 }
0x136a   :  { %2668 = vmatpush3.bf16.msra.mxu1 %v2775_v7  ;;  %v2578_v50 = vmul.f32 -1.442695, %v2272_v14 }
0x136b   :  { %2934 = vpow2.f32 %v2577_v12 }
0x136c   :  { %2936 = vtanh.f32 %v2272_v14 }
0x1375   :  { %v2935_v15 = vpop.eup %2934 }
0x1376   :  { %v2276_v56 = vadd.f32 1.0, %v2935_v15  ;;  %v2937_v49 = vpop.eup %2936 }
0x1378   :  { %2938 = vrcp.f32 %v2276_v56 }
0x1379   :  { %2940 = vpow2.f32 %v2578_v50 }
0x1382   :  { %v2939_v20 = vpop.eup %2938 }
0x1383   :  { %v2287_v18 = vmul.f32 %v2939_v20, %v2937_v49  ;;  %v2941_v22 = vpop.eup %2940  ;;  %v2286_v30 = vmul.f32 %v2939_v20, %v2214_v17 }
0x1384   :  { %v2283_v51 = vadd.f32 1.0, %v2941_v22 }
0x1385   :  { %2289 = vrot.lane.b32.xlu1 %v2287_v18, %s4190_s23 }
0x1386   :  { %2942 = vrcp.f32 %v2283_v51 }
0x1389   :  { %1828 = vrot.lane.b32.xlu1 %v4013_v5, %s4190_s23 }
0x138d   :  { %1984 = vrot.lane.b32.xlu1 %v4049_v4, %s4190_s23 }
0x1390   :  { %v2943_v4 = vpop.eup %2942 }
0x1391   :  { %2140 = vrot.lane.b32.xlu1 %v4083_v61, %s4190_s23  ;;  %v2305_v61 = vld [vmem:[#allocation2 + $0x20] sm:$0xff] }
0x13f7   :  { %v2290_v25 = vpop.permute.xlu1 %2289 }
0x13f8   :  { %v2292_v34 = vadd.f32 %v2290_v25, %v2286_v30 }
0x13fa   :  { %2944 = vtanh.f32 %v2292_v34  ;;  %2439 = vrot.lane.b32.xlu0 %v2292_v34, %s4190_s23 }
0x13fb   :  { %v1829_v33 = vpop.permute.xlu1 %1828 }
0x13fc   :  { %1832 = vst.msk [vmem:[#allocation2 + $0x8] sm:$0xff] %vm457_vm1, %v1829_v33 }
0x13ff   :  { %v1985_v5 = vpop.permute.xlu1 %1984 }
0x1400   :  { %1988 = vst.msk [vmem:[#allocation2 + $0x18] sm:$0xff] %vm457_vm1, %v1985_v5 }
0x1403   :  { %v2141_v55 = vpop.permute.xlu1 %2140  ;;  %v2302_v58 = vld [vmem:[#allocation2 + $0x8] sm:$0xff] }
0x1404   :  { %v2945_v44 = vpop.eup %2944  ;;  %2144 = vst.msk [vmem:[#allocation2 + $0x28] sm:$0xff] %vm457_vm1, %v2141_v55  ;;  %v2309_v57 = vpack.c.bf16 %v2302_v58, %v2301_v52 }
0x1405   :  { %v2294_v37 = vmul.f32 %v2945_v44, %v2943_v4 }
0x1406   :  { %2669 = vmatprep.mubr.msk.bf16.mxu1 %vm457_vm1, %v2309_v57 }
0x1407   :  { %2296 = vrot.lane.b32.xlu1 %v2294_v37, %s4190_s23  ;;  %v2304_v59 = vld [vmem:[#allocation2 + $0x18] sm:$0xff] }
0x1408   :  { %v2310_v60 = vpack.c.bf16 %v2304_v59, %v2303_v32 }
0x140a   :  { %2670 = vmatmul.mubr.msk.bf16.vlgmr.msra.gmra.mrb[36].mxu1 %vm457_vm1, %v2310_v60 }
0x140b   :  { %v2306_v45 = vld [vmem:[#allocation2 + $0x28] sm:$0xff] }
0x140c   :  { %v2311_v46 = vpack.c.bf16 %v2306_v45, %v2305_v61 }
0x140e   :  { %2673 = vmatprep.mubr.msk.bf16.mxu1 %vm457_vm1, %v2311_v46 }
0x146c   :  { %v2440_v16 = vpop.permute.xlu0 %2439 }
0x146d   :  { %2442 = vst.msk [vmem:[#allocation23] sm:$0xff] %vm457_vm1, %v2440_v16 }
0x1479   :  { %v2297_v13 = vpop.permute.xlu1 %2296 }
0x147a   :  { %2300 = vst.msk [vmem:[#allocation2 + $0x38] sm:$0xff] %vm457_vm1, %v2297_v13  ;;  %2437 = vst.msk [vmem:[#allocation21] sm:$0xff] %vm457_vm1, %v2297_v13 }
0x1481   :  { %v2308_v43 = vld [vmem:[#allocation2 + $0x38] sm:$0xff] }
0x1482   :  { %v2312_v41 = vpack.c.bf16 %v2308_v43, %v2307_v28 }
0x1484   :  { %2674 = vmatmul.mubr.msk.bf16.gmra.mrb[40].mxu1 %vm457_vm1, %v2312_v41 }
0x14dd   :  { %v2671_v0 = vpop.f32.mrb[36].mxu1 }
0x14de   :  { %v2407_v3 = vadd.f32 %v2671_v0, %v2579_v1  ;;  %v2398_v62 = vpop.f32.mrb[37].mxu1 }
0x14df   :  { %v2399_v35 = vadd.f32 %v2579_v1, %v2398_v62  ;;  %v2672_v36 = vpop.f32.mrb[38].mxu1 }
0x14e0   :  { %2431 = vst [vmem:[#allocation20 + $0x10] sm:$0xff] %v2407_v3  ;;  %v2410_v10 = vadd.f32 %v2672_v36, %v2579_v1  ;;  %v2401_v54 = vpop.f32.mrb[39].mxu1 }
0x14e1   :  { %3185 = shalt.err (!%p3182_p0)
}
0x14e2   :  { %s3186_s3 = scalar_lea.hbm %s4183_s15, 128 }
0x14e3   :  { %p3187_p1 = scmp.ne.s32.totalorder %s4183_s15, %s3186_s3  ;;  %p3190_p2 = scmp.lt.u32.totalorder %s3186_s3, %s4183_s15 }
0x14e5   :  { %p3192_p3 = pnand %p3190_p2, %p3187_p1 }
0x14e7   :  { %3195 = shalt.err (!%p3192_p3)
}
0x14e8   :  { %2464 = dma.vmem_to_hbm [thread:$0]  %s2462_s24, 128, %s4183_s15, [#allocation22]   ;;  %2429 = vst [vmem:[#allocation20] sm:$0xff] %v2399_v35  ;;  %v2402_v24 = vadd.f32 %v2579_v1, %v2401_v54  ;;  %2432 = vst [vmem:[#allocation20 + $0x18] sm:$0xff] %v2410_v10 }
0x14e9   :  { %s3275_s5 = smov [#allocation23]  }
0x14ea   :  { %s2471_s2 = sshll.u32 %s3275_s5, 4  ;;  %2430 = vst [vmem:[#allocation20 + $0x8] sm:$0xff] %v2402_v24  ;;  %s2472_s2 = int_to_ptr.vmem [resolvable:$true] %s2471_s2 }
0x14eb   :  { %s3196_s29 = scalar_lea.vmem %s2472_s2, 128  ;;  %p3201_p5 = scmp.lt.s32.totalorder %s2472_s2, %s2472_s2 }
0x14ec   :  { %p3197_p4 = scmp.ne.s32.totalorder %s2472_s2, %s3196_s29  ;;  %p3202_p6 = scmp.lt.s32.totalorder %s3196_s29, %s3196_s29 }
0x14ee   :  { %p3203_p7 = por %p3202_p6, %p3201_p5 }
0x14f0   :  { %p3204_p8 = pnand %p3203_p7, %p3197_p4 }
0x14f2   :  { %3207 = shalt.err (!%p3204_p8)
}
0x14f3   :  { %s3208_s28 = scalar_lea.hbm %s4184_s16, 128 }
0x14f4   :  { %p3209_p9 = scmp.ne.s32.totalorder %s4184_s16, %s3208_s28  ;;  %p3212_p10 = scmp.lt.u32.totalorder %s3208_s28, %s4184_s16 }
0x14f6   :  { %p3214_p11 = pnand %p3212_p10, %p3209_p9 }
0x14f8   :  { %3217 = shalt.err (!%p3214_p11)
}
0x14f9   :  { %2474 = dma.vmem_to_hbm [thread:$0]  %s2472_s2, 128, %s4184_s16, [#allocation22]  }
0x14fa   :  { %s3276_s17 = smov [#allocation20]  }
0x14fb   :  { %s2448_s11 = sshll.u32 %s3276_s17, 4  ;;  %s2449_s11 = int_to_ptr.vmem [resolvable:$true] %s2448_s11 }
0x14fc   :  { %s3218_s23 = scalar_lea.vmem %s2449_s11, 1024  ;;  %p3223_p13 = scmp.lt.s32.totalorder %s2449_s11, %s2449_s11 }
0x14fd   :  { %p3219_p12 = scmp.ne.s32.totalorder %s2449_s11, %s3218_s23  ;;  %p3224_p0 = scmp.lt.s32.totalorder %s3218_s23, %s3218_s23 }
0x14ff   :  { %p3225_p1 = por %p3224_p0, %p3223_p13 }
0x1501   :  { %p3226_p2 = pnand %p3225_p1, %p3219_p12 }
0x1557   :  { %v2675_v42 = vpop.f32.mrb[40].mxu1 }
0x1558   :  { %v2423_v31 = vadd.f32 %v2675_v42, %v2579_v1  ;;  %v2414_v29 = vpop.f32.mrb[41].mxu1 }
0x1559   :  { %v2415_v17 = vadd.f32 %v2579_v1, %v2414_v29  ;;  %v2676_v8 = vpop.f32.mrb[42].mxu1 }
0x155a   :  { %2435 = vst [vmem:[#allocation20 + $0x30] sm:$0xff] %v2423_v31  ;;  %v2426_v39 = vadd.f32 %v2676_v8, %v2579_v1  ;;  %v2417_v2 = vpop.f32.mrb[43].mxu1 }
0x155b   :  { %2433 = vst [vmem:[#allocation20 + $0x20] sm:$0xff] %v2415_v17  ;;  %v2418_v27 = vadd.f32 %v2579_v1, %v2417_v2 }
0x155c   :  { %2436 = vst [vmem:[#allocation20 + $0x38] sm:$0xff] %v2426_v39 }
0x155d   :  { %2434 = vst [vmem:[#allocation20 + $0x28] sm:$0xff] %v2418_v27 }
0x155e   :  { %3229 = shalt.err (!%p3226_p2)
}
0x155f   :  { %s3230_s24 = scalar_lea.hbm %s4182_s14, 1024 }
0x1560   :  { %p3231_p3 = scmp.ne.s32.totalorder %s4182_s14, %s3230_s24  ;;  %p3234_p4 = scmp.lt.u32.totalorder %s3230_s24, %s4182_s14 }
0x1562   :  { %p3236_p5 = pnand %p3234_p4, %p3231_p3 }
0x1564   :  { %3239 = shalt.err (!%p3236_p5)
}
0x1565   :  { %2454 = dma.vmem_to_hbm [thread:$0]  %s2449_s11, 1024, %s4182_s14, [#allocation5], %s3262_s6, %s3262_s6, %s3263_s20  }
0x1566   :  { %3252 = dma.done.wait [#allocation5], 1024  }
0x1567   :  { %3253 = vsyncadd [#allocation5], 4294966272 }
0x1568   :  { %3254 = dma.done.wait [#allocation22], 256  }
0x1569   :  { %3255 = vsyncadd [#allocation22], 4294967040 }
0x156a   :  { %2484 = vsyncpa [#allocation4], 1 }
0x156b   :  { %2485 = vsyncpa [#allocation7], 1 }
0x156c   :  { %2486 = vsyncpa [#allocation10], 1 }
0x156d   :  { %2487 = vsyncpa [#allocation13], 1 }
0x156e   :  { %2488 = vsyncpa [#allocation16], 1 }
0x156f   :  { %2489 = vsyncpa [#allocation19], 1 }
0x1570   :  { %2490 = vsyncpa [#allocation5], 1 }
0x1571   :  { %2491 = vsyncpa [#allocation22], 1 }

</bundles_post_ra>
